<compile_context>
chip_gen: v5e
topology: v5e:2x2
jax: 0.10.0
libtpu: 0.0.40
codegen_flags: <defaults>
</compile_context>

<pallas_src>
import functools

import jax
import jax.numpy as jnp
from jax.experimental import pallas as pl
from jax.experimental.pallas import tpu as pltpu


def _conv_lstm_kernel(x_ref, w_ref, c_ref, c_out_ref, h_out_ref, *, hidden):
    """One (batch, spatial-tile) grid step.

    x_ref     : (1, Kdim, TN)      im2col'd [x, h] columns (+ ones row)
    w_ref     : (4*hidden, Kdim)   conv weight (+ bias column), grid-invariant
    c_ref     : (1, hidden, TN)    previous cell state, channel-major
    c_out_ref : (1, hidden, TN)
    h_out_ref : (1, hidden, TN)
    """
    # Fused conv (+ bias): a single big MXU matmul with f32 accumulation.
    acc = jnp.dot(w_ref[...], x_ref[0],
                  preferred_element_type=jnp.float32)       # (4*hidden, TN) f32

    # LSTM gates: sublane slices of the accumulator -> all ops are lane-dense.
    a = jax.nn.sigmoid(acc[0 * hidden:1 * hidden])
    b = jax.nn.sigmoid(acc[1 * hidden:2 * hidden])
    g = jax.nn.sigmoid(acc[2 * hidden:3 * hidden])
    d = jnp.tanh(acc[3 * hidden:4 * hidden])

    c_prev = c_ref[0].astype(jnp.float32)
    c_new = a * c_prev + g * d
    h_new = b * jnp.tanh(c_new)

    c_out_ref[0] = c_new.astype(c_out_ref.dtype)
    h_out_ref[0] = h_new.astype(h_out_ref.dtype)


def _pick_spatial_tile(hw, kdim, hidden, cout,
                       vmem_budget_bytes=12 * 1024 * 1024, max_cols=2048):
    """Largest 128-multiple spatial tile that divides H*W within a VMEM budget."""
    # Rough per-column bytes: x block (x2 buffers) + c/out blocks + f32 accumulator.
    bytes_per_col = 4 * (2 * kdim + 6 * hidden + cout)
    cap = max(128, min(max_cols, vmem_budget_bytes // max(bytes_per_col, 1)))
    if hw % 128 != 0:
        return hw                       # tiny/odd spatial: one full-width tile
    tn = 128
    for t in range(128, min(hw, cap) + 1, 128):
        if hw % t == 0:
            tn = t
    return tn


def conv_lstm_cell(x, state, weight, bias, kernel_size=3, compute_dtype=None):
    """ConvLSTMCell.forward (matches the PyTorch module, NCHW in/out).

    x      : (B, Cin, H, W)
    state  : (c, h), each (B, hidden, H, W)
    weight : (4*hidden, Cin + hidden, K, K)   nn.Conv2d OIHW weight
    bias   : (4*hidden,)
    compute_dtype : optional dtype for the matmul operands (e.g. jnp.bfloat16
        on v6e/v7x).  Accumulation and gate math always stay in float32.
    """
    c, h = state
    B, Cin, H, W = x.shape
    hidden = c.shape[1]
    K = kernel_size
    pad = K // 2
    cin_tot = Cin + hidden
    cout = 4 * hidden
    HW = H * W
    if compute_dtype is None:
        compute_dtype = x.dtype

    # --- wrapper glue (all channel-major / NCHW native: no transposes) ------
    xin = jnp.concatenate([x, h], axis=1)                      # (B, cin_tot, H, W)
    xpad = jnp.pad(xin, ((0, 0), (0, 0), (pad, pad), (pad, pad)))
    # im2col: rows ordered tap-major / channel-minor to match w_flat below.
    taps = [xpad[:, :, ky:ky + H, kx:kx + W]
            for ky in range(K) for kx in range(K)]
    xcol = jnp.stack(taps, axis=1).reshape(B, K * K * cin_tot, HW)
    # Fold the conv bias into the matmul: append a ones row / a bias column.
    xcol = jnp.concatenate(
        [xcol, jnp.ones((B, 1, HW), xcol.dtype)], axis=1).astype(compute_dtype)
    kdim = K * K * cin_tot + 1

    w_flat = jnp.transpose(weight, (0, 2, 3, 1)).reshape(cout, K * K * cin_tot)
    w_aug = jnp.concatenate([w_flat, bias[:, None]], axis=1).astype(compute_dtype)

    c_flat = c.reshape(B, hidden, HW)

    tn = _pick_spatial_tile(HW, kdim, hidden, cout)
    n_tiles = HW // tn

    kern = functools.partial(_conv_lstm_kernel, hidden=hidden)
    out_dtype = x.dtype

    # NOTE: the weight block is grid-invariant (index_map -> (0, 0)), so it is
    # only DMA'd once; pl.Buffered(1) could additionally single-buffer it to
    # save VMEM on v7x when hidden is large, but it is tiny at these sizes.
    c_out, h_out = pl.pallas_call(
        kern,
        out_shape=(
            jax.ShapeDtypeStruct((B, hidden, HW), out_dtype),
            jax.ShapeDtypeStruct((B, hidden, HW), out_dtype),
        ),
        grid_spec=pltpu.PrefetchScalarGridSpec(
            num_scalar_prefetch=0,
            grid=(B, n_tiles),
            in_specs=[
                pl.BlockSpec((1, kdim, tn), lambda bi, j: (bi, 0, j)),
                pl.BlockSpec((cout, kdim), lambda bi, j: (0, 0)),
                pl.BlockSpec((1, hidden, tn), lambda bi, j: (bi, 0, j)),
            ],
            out_specs=[
                pl.BlockSpec((1, hidden, tn), lambda bi, j: (bi, 0, j)),
                pl.BlockSpec((1, hidden, tn), lambda bi, j: (bi, 0, j)),
            ],
        ),
        compiler_params=pltpu.CompilerParams(
            dimension_semantics=("parallel", "parallel"),
            vmem_limit_bytes=32 * 1024 * 1024,
        ),
    )(xcol, w_aug, c_flat)

    # Lane-dense outputs reshape straight back to NCHW (no transpose needed).
    c_new = c_out.reshape(B, hidden, H, W)
    h_new = h_out.reshape(B, hidden, H, W)
    return c_new, h_new


def conv_lstm_cell_ref(x, state, weight, bias):
    """Pure-JAX reference (mirrors the PyTorch module, NCHW)."""
    c, h = state
    hidden = c.shape[1]
    xin = jnp.concatenate([x, h], axis=1)
    out = jax.lax.conv_general_dilated(
        xin, weight, window_strides=(1, 1), padding="SAME",
        dimension_numbers=("NCHW", "OIHW", "NCHW"))
    out = out + bias[None, :, None, None]
    a, b, g, d = jnp.split(out, 4, axis=1)
    a = jax.nn.sigmoid(a)
    b = jax.nn.sigmoid(b)
    g = jax.nn.sigmoid(g)
    d = jnp.tanh(d)
    c_new = a * c + g * d
    h_new = b * jnp.tanh(c_new)
    return c_new, h_new


if __name__ == "__main__":
    # Small deterministic example: batch=2, x_in=4, hidden=32, spatial=16x16.
    B, Cin, H, W = 2, 4, 16, 16
    hidden, K = 32, 3

    key = jax.random.PRNGKey(0)
    kx, kc, kh, kw, kb = jax.random.split(key, 5)

    x = jax.random.normal(kx, (B, Cin, H, W), jnp.float32)
    c0 = jax.random.normal(kc, (B, hidden, H, W), jnp.float32)
    h0 = jax.random.normal(kh, (B, hidden, H, W), jnp.float32)

    # Deterministic synthetic parameters (shapes match nn.Conv2d(Cin+hid, 4*hid, 3)).
    fan_in = (Cin + hidden) * K * K
    weight = (jax.random.normal(kw, (4 * hidden, Cin + hidden, K, K),
                                jnp.float32) / jnp.sqrt(fan_in))
    bias = 0.01 * jax.random.normal(kb, (4 * hidden,), jnp.float32)

    c_ref, h_ref = conv_lstm_cell_ref(x, (c0, h0), weight, bias)

    # f32 path (validation-grade accuracy).
    c_new, h_new = conv_lstm_cell(x, (c0, h0), weight, bias, kernel_size=K)
    jax.block_until_ready((c_new, h_new))
    assert c_new.shape == (B, hidden, H, W) and h_new.shape == (B, hidden, H, W)
    assert jnp.allclose(c_new, c_ref, atol=1e-4, rtol=1e-4)
    assert jnp.allclose(h_new, h_ref, atol=1e-4, rtol=1e-4)

    # bf16-operand / f32-accumulate path (v6e/v7x MXU throughput option).
    c_bf, h_bf = conv_lstm_cell(x, (c0, h0), weight, bias, kernel_size=K,
                                compute_dtype=jnp.bfloat16)
    jax.block_until_ready((c_bf, h_bf))
    assert jnp.allclose(c_bf, c_ref, atol=1e-1, rtol=1e-1)
    assert jnp.allclose(h_bf, h_ref, atol=1e-1, rtol=1e-1)

    print("KERNEL_OK")
</pallas_src>

<mosaic_0001>
module attributes {stable_mosaic.version = 11 : i64} {
  func.func @_conv_lstm_kernel(%arg0: i32, %arg1: i32, %arg2: memref<1x325x256xf32, #tpu.memory_space<vmem>>, %arg3: memref<128x325xf32, #tpu.memory_space<vmem>>, %arg4: memref<1x32x256xf32, #tpu.memory_space<vmem>>, %arg5: memref<1x32x256xf32, #tpu.memory_space<vmem>>, %arg6: memref<1x32x256xf32, #tpu.memory_space<vmem>>) attributes {dimension_semantics = [#tpu.dimension_semantics<parallel>, #tpu.dimension_semantics<parallel>], iteration_bounds = array<i64: 2, 1>, scalar_prefetch = 0 : i64, scratch_operands = 0 : i64, tpu.core_type = #tpu.core_type<tc>, window_params = [{transform_indices = @transform_0, window_bounds = array<i64: 1, 325, 256>}, {pipeline_mode = #tpu.pipeline_mode<synchronous>, transform_indices = @transform_1, window_bounds = array<i64: 128, 325>}, {transform_indices = @transform_2, window_bounds = array<i64: 1, 32, 256>}, {transform_indices = @transform_3, window_bounds = array<i64: 1, 32, 256>}, {transform_indices = @transform_4, window_bounds = array<i64: 1, 32, 256>}]} {
    %c0 = arith.constant 0 : index
    %c0_0 = arith.constant 0 : index
    %0 = vector.load %arg3[%c0, %c0_0] : memref<128x325xf32, #tpu.memory_space<vmem>>, vector<128x325xf32>
    %c0_1 = arith.constant 0 : index
    %c0_2 = arith.constant 0 : index
    %c0_3 = arith.constant 0 : index
    %1 = vector.load %arg2[%c0_1, %c0_2, %c0_3] : memref<1x325x256xf32, #tpu.memory_space<vmem>>, vector<1x325x256xf32>
    %2 = vector.shape_cast %1 : vector<1x325x256xf32> to vector<325x256xf32>
    %cst = arith.constant dense<0.000000e+00> : vector<128x256xf32>
    %3 = tpu.matmul %0, %2, %cst {dimension_numbers = #tpu.dot_dimension_numbers<[1], [0], [0], [1], [0, 0, 1, 1], [], []>} : vector<128x325xf32>, vector<325x256xf32>, vector<128x256xf32> -> vector<128x256xf32>
    %4 = vector.extract_strided_slice %3 {offsets = [0, 0], sizes = [32, 256], strides = [1, 1]} : vector<128x256xf32> to vector<32x256xf32>
    %5 = arith.negf %4 : vector<32x256xf32>
    %6 = math.exp %5 : vector<32x256xf32>
    %cst_4 = arith.constant 1.000000e+00 : f32
    %7 = vector.broadcast %cst_4 : f32 to vector<32x256xf32>
    %8 = arith.addf %7, %6 : vector<32x256xf32>
    %9 = arith.divf %7, %8 : vector<32x256xf32>
    %10 = vector.extract_strided_slice %3 {offsets = [32, 0], sizes = [32, 256], strides = [1, 1]} : vector<128x256xf32> to vector<32x256xf32>
    %11 = arith.negf %10 : vector<32x256xf32>
    %12 = math.exp %11 : vector<32x256xf32>
    %cst_5 = arith.constant 1.000000e+00 : f32
    %13 = vector.broadcast %cst_5 : f32 to vector<32x256xf32>
    %14 = arith.addf %13, %12 : vector<32x256xf32>
    %15 = arith.divf %13, %14 : vector<32x256xf32>
    %16 = vector.extract_strided_slice %3 {offsets = [64, 0], sizes = [32, 256], strides = [1, 1]} : vector<128x256xf32> to vector<32x256xf32>
    %17 = arith.negf %16 : vector<32x256xf32>
    %18 = math.exp %17 : vector<32x256xf32>
    %cst_6 = arith.constant 1.000000e+00 : f32
    %19 = vector.broadcast %cst_6 : f32 to vector<32x256xf32>
    %20 = arith.addf %19, %18 : vector<32x256xf32>
    %21 = arith.divf %19, %20 : vector<32x256xf32>
    %22 = vector.extract_strided_slice %3 {offsets = [96, 0], sizes = [32, 256], strides = [1, 1]} : vector<128x256xf32> to vector<32x256xf32>
    %23 = math.tanh %22 : vector<32x256xf32>
    %c0_7 = arith.constant 0 : index
    %c0_8 = arith.constant 0 : index
    %c0_9 = arith.constant 0 : index
    %24 = vector.load %arg4[%c0_7, %c0_8, %c0_9] : memref<1x32x256xf32, #tpu.memory_space<vmem>>, vector<1x32x256xf32>
    %25 = vector.shape_cast %24 : vector<1x32x256xf32> to vector<32x256xf32>
    %26 = arith.mulf %9, %25 : vector<32x256xf32>
    %27 = arith.mulf %21, %23 : vector<32x256xf32>
    %28 = arith.addf %26, %27 : vector<32x256xf32>
    %29 = math.tanh %28 : vector<32x256xf32>
    %30 = arith.mulf %15, %29 : vector<32x256xf32>
    %c0_10 = arith.constant 0 : index
    %c0_11 = arith.constant 0 : index
    %c0_12 = arith.constant 0 : index
    %31 = vector.load %arg5[%c0_10, %c0_11, %c0_12] : memref<1x32x256xf32, #tpu.memory_space<vmem>>, vector<1x32x256xf32>
    %32 = vector.shape_cast %31 : vector<1x32x256xf32> to vector<32x256xf32>
    %33 = vector.shape_cast %28 : vector<32x256xf32> to vector<1x32x256xf32>
    tpu.vector_store %arg5[%c0_10, %c0_11, %c0_12], %33 {strides = array<i32>} : memref<1x32x256xf32, #tpu.memory_space<vmem>>, vector<1x32x256xf32>,
    %c0_13 = arith.constant 0 : index
    %c0_14 = arith.constant 0 : index
    %c0_15 = arith.constant 0 : index
    %34 = vector.load %arg6[%c0_13, %c0_14, %c0_15] : memref<1x32x256xf32, #tpu.memory_space<vmem>>, vector<1x32x256xf32>
    %35 = vector.shape_cast %34 : vector<1x32x256xf32> to vector<32x256xf32>
    %36 = vector.shape_cast %30 : vector<32x256xf32> to vector<1x32x256xf32>
    tpu.vector_store %arg6[%c0_13, %c0_14, %c0_15], %36 {strides = array<i32>} : memref<1x32x256xf32, #tpu.memory_space<vmem>>, vector<1x32x256xf32>,
    return
  }
  func.func @transform_0(%arg0: i32, %arg1: i32) -> (i32, i32, i32) {
    %c0_i32 = arith.constant 0 : i32
    %c0_i32_0 = arith.constant 0 : i32
    return %arg0, %c0_i32, %arg1 : i32, i32, i32
  }
  func.func @transform_1(%arg0: i32, %arg1: i32) -> (i32, i32) {
    %c0_i32 = arith.constant 0 : i32
    %c0_i32_0 = arith.constant 0 : i32
    %c0_i32_1 = arith.constant 0 : i32
    return %c0_i32, %c0_i32_0 : i32, i32
  }
  func.func @transform_2(%arg0: i32, %arg1: i32) -> (i32, i32, i32) {
    %c0_i32 = arith.constant 0 : i32
    %c0_i32_0 = arith.constant 0 : i32
    return %arg0, %c0_i32, %arg1 : i32, i32, i32
  }
  func.func @transform_3(%arg0: i32, %arg1: i32) -> (i32, i32, i32) {
    %c0_i32 = arith.constant 0 : i32
    %c0_i32_0 = arith.constant 0 : i32
    return %arg0, %c0_i32, %arg1 : i32, i32, i32
  }
  func.func @transform_4(%arg0: i32, %arg1: i32) -> (i32, i32, i32) {
    %c0_i32 = arith.constant 0 : i32
    %c0_i32_0 = arith.constant 0 : i32
    return %arg0, %c0_i32, %arg1 : i32, i32, i32
  }
}

</mosaic_0001>

<bundles_post_ra>
// kernel: tpu_custom_call.1
= control target key start
LH: loop header
LB: loop body
LE: loop exit
PB: predicated region body
PF: predicated region fallthrough
CT: control target
= control target key end

     0   :  { %10 = vsyncpa [#allocation3], 0  ;;  %s3352_s0 = inlined_call_operand.vmem [shape: f32[2,325,256], index: 0, kind: input, shape index: {}]   ;;  %s3353_s1 = inlined_call_operand.vmem [shape: f32[128,325], index: 1, kind: input, shape index: {}]   ;;  %s3354_s2 = inlined_call_operand.vmem [shape: f32[2,32,256], index: 2, kind: input, shape index: {}]   ;;  %s3355_s3 = inlined_call_operand.hbm [shape: f32[2,32,256], index: 3, kind: output, shape index: {0}]   ;;  %s3356_s4 = inlined_call_operand.hbm [shape: f32[2,32,256], index: 4, kind: output, shape index: {1}]  }
   0x1   :  { %12 = vsyncpa [#allocation3 + $0x1], 0 }
   0x2   :  { %13 = vsyncpa [#allocation5], 0 }
   0x3   :  { %15 = vsyncpa [#allocation5 + $0x1], 0  ;;  %s1990_s15 = smov 0   ;;  %s1992_s16 = smov 0  }
   0x4   :  { %s1994_s17 = smov 0   ;;  %s1996_s18 = smov 0  }
   0x5   :  { %s1998_s19 = smov 0   ;;  %s2000_s20 = smov 0  }
   0x6 LB: > { %s1556_s21 = sadd.s32 4294967295, %s1961_s20   ;;  %s1557_s22 = sadd.s32 4294967294, %s1961_s20   ;;  %s1961_s20 = sphi %s2000_s20, %s21_s20   ;;  %s1957_s19 = sphi %s1998_s19, %s3439_s19   ;;  %s1953_s18 = sphi %s1996_s18, %s3438_s18   ;;  %s1949_s17 = sphi %s1994_s17, %s3437_s17   ;;  %s1945_s16 = sphi %s1992_s16, %s3436_s16   ;;  %s1941_s15 = sphi %s1990_s15, %s3435_s15  }
   0x7   : > { %s33_s23 = sadd.s32 1, %s1957_s19  ;;  %s119_s24 = sadd.s32 1, %s1949_s17 }
   0x8   : > { %p35_p0 = scmp.ge.s32.totalorder %s33_s23, 2  ;;  %p129_p1 = scmp.ne.s32.totalorder %s1949_s17, %s1945_s16 }
   0x9   : > { %p130_p2 = scmp.eq.s32.totalorder %s1556_s21, 1  ;;  %p135_p3 = scmp.ne.s32.totalorder %s1945_s16, %s1941_s15 }
   0xa   : > { %s3441_s23 = smov (%p35_p0, %s33_s23), 0  ;;  %p136_p5 = scmp.eq.s32.totalorder %s1557_s22, 1 }
   0xb   : > { %p2030_p4 = por %p130_p2, %p129_p1  ;;  %s114_s26 = ssub.s32 %s1957_s19, %s3441_s23 }
   0xc   : > { %p1560_p6 = scmp.ge.s32.totalorder %s1961_s20, 1  ;;  %p117_p7 = scmp.eq.s32.totalorder %s114_s26, 0 }
   0xd   : > { %p2037_p8 = por %p136_p5, %p135_p3  ;;  %p211_p9 = scmp.lt.s32.totalorder %s1961_s20, 3 }
   0xe   : > { %s2043_s28 = scalar_select %p117_p7, %s1949_s17, %s119_s24  }
   0xf   : > { %p212_p10 = pnand %p1560_p6, %p211_p9 }
  0x11   : > { %215 = sbr.rel (%p212_p10) target bundleno = 417 (0x1a1), region = 32 }
  0x16   : > { %p256_p11 = scmp.lt.s32.totalorder %s1953_s18, 1  ;;  %vm456_vm0 = vcmask 1044480   ;;  %v2078_v18 = vld [vmem:[%s3353_s1 + $0x10] sm:$0xff]  ;;  %vm407_vm1 = vcmask 564224   ;;  %v2089_v23 = vld [vmem:[%s3353_s1 + $0xe8] sm:$0xff]  ;;  %v2115_v37 = vld [vmem:[%s3353_s1 + $0x100] sm:$0xff] }
  0x17   : > { %v2101_v29 = vld [vmem:[%s3353_s1 + $0x28] sm:$0xff]  ;;  %v2120_v38 = vld [vmem:[%s3353_s1 + $0xc0] sm:$0xff]  ;;  %v2153_v52 = vld [vmem:[%s3353_s1 + $0x118] sm:$0xff]  ;;  %s1633_s9 = sshll.u32 %s1953_s18, 6 }
  0x18   : > { %s2047_s29 = scalar_select %p256_p11, %s1953_s18, 1  ;;  %v2126_v40 = vld [vmem:[%s3353_s1] sm:$0xff]  ;;  %v2158_v53 = vld [vmem:[%s3353_s1 + $0xd8] sm:$0xff] }
  0x19   : > { %v2131_v41 = vld [vmem:[%s3353_s1 + $0x40] sm:$0xff]  ;;  %v2164_v55 = vld [vmem:[%s3353_s1 + $0x18] sm:$0xff]  ;;  %s1400_s12 = scalar_lea.hbm %s3355_s3, %s1633_s9 }
  0x1a   : > { %s1660_s30 = smul.u32 656, %s2047_s29  ;;  %v2170_v57 = vld [vmem:[%s3353_s1 + $0x58] sm:$0xff]  ;;  %s1632_s22 = sshll.u32 %s2047_s29, 6 }
  0x1b   : > { %s2588_s26 = scalar_lea.vmem %s3354_s2, %s1632_s22  ;;  %s3286_s22 = scalar_lea.hbm %s3356_s4, %s1633_s9 }
  0x1c   : > { %s2053_s7 = scalar_lea.vmem %s3352_s0, %s1660_s30  ;;  %s3009_s30 = sand.u32 1, %s1945_s16  }
  0x1d   : > { %v355_v0 = vld [vmem:[%s2053_s7 + $0xf0] sm:$0xff]  ;;  %v405_v1 = vld [vmem:[%s2053_s7 + $0x280] sm:$0x1f]  ;;  %v388_v19 = vld [vmem:[%s2053_s7 + $0x1f8] sm:$0xff]  ;;  %s1561_s5 = sshll.u32 %s3009_s30, 6  ;;  %s1382_s29 = scalar_lea.sflag [#allocation3], %s3009_s30 }
  0x1e   : > { %v353_v2 = vld [vmem:[%s2053_s7 + $0xe0] sm:$0xff]  ;;  %1635 = vmatpush.msra.mxu1 %v355_v0  ;;  %1566 = vmatpush.msk.msra.mxu2 %vm456_vm0, %v405_v1  ;;  %v403_v3 = vld [vmem:[%s2053_s7 + $0x270] sm:$0xff]  ;;  %v386_v22 = vld [vmem:[%s2053_s7 + $0x1e8] sm:$0xff]  ;;  %s3076_s6 = scalar_lea.vmem [#allocation2], %s1561_s5  ;;  %s3132_s8 = scalar_lea.vmem [#allocation4], %s1561_s5 }
  0x1f   : > { %463 = vmatpush.msra.mxu0 %v355_v0  ;;  %v351_v4 = vld [vmem:[%s2053_s7 + $0xd0] sm:$0xff]  ;;  %v401_v5 = vld [vmem:[%s2053_s7 + $0x260] sm:$0xff]  ;;  %1651 = vmatpush.msk.msra.mxu3 %vm456_vm0, %v405_v1  ;;  %v384_v25 = vld [vmem:[%s2053_s7 + $0x1d8] sm:$0xff]  ;;  %s1401_s13 = sshll.u32 %s3076_s6, 4  ;;  %s3273_s13 = int_to_ptr.vmem [resolvable:$true] %s1401_s13 }
  0x20   : > { %1636 = vmatpush.msra.mxu1 %v353_v2  ;;  %601 = vmatpush.msra.mxu2 %v403_v3  ;;  %v349_v6 = vld [vmem:[%s2053_s7 + $0xc0] sm:$0xff]  ;;  %v399_v7 = vld [vmem:[%s2053_s7 + $0x250] sm:$0xff]  ;;  %v356_v26 = vld [vmem:[%s2053_s7 + $0xf8] sm:$0xff] }
  0x21   : > { %464 = vmatpush.msra.mxu0 %v353_v2  ;;  %1652 = vmatpush.msra.mxu3 %v403_v3  ;;  %v347_v8 = vld [vmem:[%s2053_s7 + $0xb0] sm:$0xff]  ;;  %v397_v9 = vld [vmem:[%s2053_s7 + $0x240] sm:$0xff]  ;;  %v382_v28 = vld [vmem:[%s2053_s7 + $0x1c8] sm:$0xff] }
  0x22   : > { %1637 = vmatpush.msra.mxu1 %v351_v4  ;;  %602 = vmatpush.msra.mxu2 %v401_v5  ;;  %v345_v10 = vld [vmem:[%s2053_s7 + $0xa0] sm:$0xff]  ;;  %v395_v11 = vld [vmem:[%s2053_s7 + $0x230] sm:$0xff]  ;;  %v380_v31 = vld [vmem:[%s2053_s7 + $0x1b8] sm:$0xff] }
  0x23   : > { %465 = vmatpush.msra.mxu0 %v351_v4  ;;  %1653 = vmatpush.msra.mxu3 %v401_v5  ;;  %v343_v12 = vld [vmem:[%s2053_s7 + $0x90] sm:$0xff]  ;;  %v393_v13 = vld [vmem:[%s2053_s7 + $0x220] sm:$0xff]  ;;  %v354_v32 = vld [vmem:[%s2053_s7 + $0xe8] sm:$0xff] }
  0x24   : > { %1638 = vmatpush.msra.mxu1 %v349_v6  ;;  %603 = vmatpush.msra.mxu2 %v399_v7  ;;  %v341_v14 = vld [vmem:[%s2053_s7 + $0x80] sm:$0xff]  ;;  %v391_v15 = vld [vmem:[%s2053_s7 + $0x210] sm:$0xff]  ;;  %v378_v34 = vld [vmem:[%s2053_s7 + $0x1a8] sm:$0xff] }
  0x25   : > { %466 = vmatpush.msra.mxu0 %v349_v6  ;;  %1654 = vmatpush.msra.mxu3 %v399_v7  ;;  %v339_v16 = vld [vmem:[%s2053_s7 + $0x70] sm:$0xff]  ;;  %v389_v17 = vld [vmem:[%s2053_s7 + $0x200] sm:$0xff]  ;;  %v352_v35 = vld [vmem:[%s2053_s7 + $0xd8] sm:$0xff] }
  0x26   : > { %1639 = vmatpush.msra.mxu1 %v347_v8  ;;  %604 = vmatpush.msra.mxu2 %v397_v9  ;;  %v337_v20 = vld [vmem:[%s2053_s7 + $0x60] sm:$0xff]  ;;  %v335_v21 = vld [vmem:[%s2053_s7 + $0x50] sm:$0xff]  ;;  %v406_v42 = vld [vmem:[%s2053_s7 + $0x288] sm:$0x1f] }
  0x27   : > { %467 = vmatpush.msra.mxu0 %v347_v8  ;;  %1655 = vmatpush.msra.mxu3 %v397_v9  ;;  %v333_v24 = vld [vmem:[%s2053_s7 + $0x40] sm:$0xff]  ;;  %v331_v27 = vld [vmem:[%s2053_s7 + $0x30] sm:$0xff]  ;;  %v350_v44 = vld [vmem:[%s2053_s7 + $0xc8] sm:$0xff] }
  0x28   : > { %1640 = vmatpush.msra.mxu1 %v345_v10  ;;  %605 = vmatpush.msra.mxu2 %v395_v11  ;;  %v329_v30 = vld [vmem:[%s2053_s7 + $0x20] sm:$0xff]  ;;  %v327_v33 = vld [vmem:[%s2053_s7 + $0x10] sm:$0xff]  ;;  %v404_v45 = vld [vmem:[%s2053_s7 + $0x278] sm:$0xff] }
  0x29   : > { %468 = vmatpush.msra.mxu0 %v345_v10  ;;  %1656 = vmatpush.msra.mxu3 %v395_v11  ;;  %v325_v36 = vld [vmem:[%s2053_s7] sm:$0xff]  ;;  %v387_v39 = vld [vmem:[%s2053_s7 + $0x1f0] sm:$0xff]  ;;  %v376_v46 = vld [vmem:[%s2053_s7 + $0x198] sm:$0xff] }
  0x2a   : > { %1641 = vmatpush.msra.mxu1 %v343_v12  ;;  %606 = vmatpush.msra.mxu2 %v393_v13  ;;  %v385_v43 = vld [vmem:[%s2053_s7 + $0x1e0] sm:$0xff]  ;;  %v383_v47 = vld [vmem:[%s2053_s7 + $0x1d0] sm:$0xff]  ;;  %v348_v48 = vld [vmem:[%s2053_s7 + $0xb8] sm:$0xff] }
  0x2b   : > { %469 = vmatpush.msra.mxu0 %v343_v12  ;;  %1657 = vmatpush.msra.mxu3 %v393_v13  ;;  %v402_v49 = vld [vmem:[%s2053_s7 + $0x268] sm:$0xff]  ;;  %v381_v51 = vld [vmem:[%s2053_s7 + $0x1c0] sm:$0xff]  ;;  %v379_v56 = vld [vmem:[%s2053_s7 + $0x1b0] sm:$0xff] }
  0x2c   : > { %1642 = vmatpush.msra.mxu1 %v341_v14  ;;  %607 = vmatpush.msra.mxu2 %v391_v15  ;;  %v374_v50 = vld [vmem:[%s2053_s7 + $0x188] sm:$0xff]  ;;  %v344_v58 = vld [vmem:[%s2053_s7 + $0x98] sm:$0xff]  ;;  %v377_v59 = vld [vmem:[%s2053_s7 + $0x1a0] sm:$0xff] }
  0x2d   : > { %470 = vmatpush.msra.mxu0 %v341_v14  ;;  %1658 = vmatpush.msra.mxu3 %v391_v15  ;;  %v346_v54 = vld [vmem:[%s2053_s7 + $0xa8] sm:$0xff]  ;;  %v372_v60 = vld [vmem:[%s2053_s7 + $0x178] sm:$0xff]  ;;  %v375_v63 = vld [vmem:[%s2053_s7 + $0x190] sm:$0xff] }
  0x2e   : > { %1643 = vmatpush.msra.mxu1 %v339_v16  ;;  %608 = vmatpush.msra.mxu2 %v389_v17  ;;  %v400_v61 = vld [vmem:[%s2053_s7 + $0x258] sm:$0xff]  ;;  %v342_v62 = vld [vmem:[%s2053_s7 + $0x88] sm:$0xff]  ;;  %v2190_v3 = vld [vmem:[%s3353_s1 + $0x130] sm:$0xff] }
  0x2f   : > { %1567 = vmatmul.msk.f32.vlgmr.msra.gmra.mxu2 %vm407_vm1, %v2078_v18  ;;  %471 = vmatpush.msra.mxu0 %v339_v16  ;;  %v370_v0 = vld [vmem:[%s2053_s7 + $0x168] sm:$0xff]  ;;  %v340_v1 = vld [vmem:[%s2053_s7 + $0x78] sm:$0xff]  ;;  %v373_v4 = vld [vmem:[%s2053_s7 + $0x180] sm:$0xff] }
  0x30   : > { %723 = vmatpush.msrb.mxu2 %v388_v19  ;;  %1644 = vmatpush.msra.mxu1 %v337_v20  ;;  %v398_v2 = vld [vmem:[%s2053_s7 + $0x248] sm:$0xff]  ;;  %v2196_v5 = vld [vmem:[%s3353_s1 + $0xf0] sm:$0xff]  ;;  %v368_v6 = vld [vmem:[%s2053_s7 + $0x158] sm:$0xff] }
  0x31   : > { %472 = vmatpush.msra.mxu0 %v337_v20  ;;  %1659 = vmatpush.msra.mxu3 %v389_v17  ;;  %v2202_v7 = vld [vmem:[%s3353_s1 + $0x30] sm:$0xff]  ;;  %v338_v10 = vld [vmem:[%s2053_s7 + $0x68] sm:$0xff]  ;;  %v369_v11 = vld [vmem:[%s2053_s7 + $0x160] sm:$0xff] }
  0x32   : > { %1645 = vmatpush.msra.mxu1 %v335_v21  ;;  %724 = vmatpush.msrb.mxu2 %v386_v22  ;;  %v371_v8 = vld [vmem:[%s2053_s7 + $0x170] sm:$0xff]  ;;  %v366_v12 = vld [vmem:[%s2053_s7 + $0x148] sm:$0xff]  ;;  %v336_v13 = vld [vmem:[%s2053_s7 + $0x58] sm:$0xff] }
  0x33   : > { %473 = vmatpush.msra.mxu0 %v335_v21  ;;  %1576 = vmatmul.msk.f32.vlgmr.msra.gmra.mxu3 %vm407_vm1, %v2089_v23  ;;  %v2208_v9 = vld [vmem:[%s3353_s1 + $0x70] sm:$0xff]  ;;  %v396_v14 = vld [vmem:[%s2053_s7 + $0x238] sm:$0xff]  ;;  %v334_v17 = vld [vmem:[%s2053_s7 + $0x48] sm:$0xff] }
  0x34   : > { %1646 = vmatpush.msra.mxu1 %v333_v24  ;;  %725 = vmatpush.msrb.mxu2 %v384_v25  ;;  %v367_v15 = vld [vmem:[%s2053_s7 + $0x150] sm:$0xff]  ;;  %v364_v16 = vld [vmem:[%s2053_s7 + $0x138] sm:$0xff]  ;;  %v394_v19 = vld [vmem:[%s2053_s7 + $0x228] sm:$0xff] }
  0x35   : > { %474 = vmatpush.msra.mxu0 %v333_v24  ;;  %658 = vmatpush.msrb.mxu3 %v356_v26  ;;  %v2228_v20 = vld [vmem:[%s3353_s1 + $0x148] sm:$0xff]  ;;  %v365_v21 = vld [vmem:[%s2053_s7 + $0x140] sm:$0xff]  ;;  %v332_v24 = vld [vmem:[%s2053_s7 + $0x38] sm:$0xff] }
  0x36   : > { %1647 = vmatpush.msra.mxu1 %v331_v27  ;;  %726 = vmatpush.msrb.mxu2 %v382_v28  ;;  %v2234_v22 = vld [vmem:[%s3353_s1 + $0x108] sm:$0xff]  ;;  %v363_v28 = vld [vmem:[%s2053_s7 + $0x130] sm:$0xff] }
  0x37   : > { %1568 = vmatmul.msk.f32.gmra.mxu2 %vm407_vm1, %v2101_v29  ;;  %475 = vmatpush.msra.mxu0 %v331_v27  ;;  %v2240_v25 = vld [vmem:[%s3353_s1 + $0x48] sm:$0xff] }
  0x38   : > { %1648 = vmatpush.msra.mxu1 %v329_v30  ;;  %727 = vmatpush.msrb.mxu2 %v380_v31  ;;  %v362_v26 = vld [vmem:[%s2053_s7 + $0x128] sm:$0xff]  ;;  %v360_v31 = vld [vmem:[%s2053_s7 + $0x118] sm:$0xff] }
  0x39   : > { %476 = vmatpush.msra.mxu0 %v329_v30  ;;  %659 = vmatpush.msrb.mxu3 %v354_v32  ;;  %v2246_v27 = vld [vmem:[%s3353_s1 + $0x88] sm:$0xff]  ;;  %v361_v32 = vld [vmem:[%s2053_s7 + $0x120] sm:$0xff] }
  0x3a   : > { %1649 = vmatpush.msra.mxu1 %v327_v33  ;;  %728 = vmatpush.msrb.mxu2 %v378_v34  ;;  %v330_v30 = vld [vmem:[%s2053_s7 + $0x28] sm:$0xff]  ;;  %v328_v34 = vld [vmem:[%s2053_s7 + $0x18] sm:$0xff] }
  0x3b   : > { %477 = vmatpush.msra.mxu0 %v327_v33  ;;  %660 = vmatpush.msrb.mxu3 %v352_v35  ;;  %v392_v33 = vld [vmem:[%s2053_s7 + $0x218] sm:$0xff]  ;;  %v358_v35 = vld [vmem:[%s2053_s7 + $0x108] sm:$0xff] }
  0x3c   : > { %1650 = vmatpush.msra.mxu1 %v325_v36  ;;  %1577 = vmatmul.msk.f32.gmra.mxu3 %vm407_vm1, %v2115_v37 }
  0x3d   : > { %503 = vmatmul.f32.vlgmr.msra.gmra.mxu1 %v2120_v38  ;;  %478 = vmatpush.msra.mxu0 %v325_v36  ;;  %v359_v36 = vld [vmem:[%s2053_s7 + $0x110] sm:$0xff] }
  0x3e   : > { %528 = vmatpush.msrb.mxu1 %v387_v39  ;;  %479 = vmatmul.f32.vlgmr.msra.gmra.mxu0 %v2126_v40  ;;  %v390_v39 = vld [vmem:[%s2053_s7 + $0x208] sm:$0xff] }
  0x3f   : > { %1569 = vmatmul.msk.f32.gmra.mxu2 %vm407_vm1, %v2131_v41  ;;  %1583 = vmatpush.msk.msrb.mxu0 %vm456_vm0, %v406_v42  ;;  %v2266_v42 = vld [vmem:[%s3353_s1 + $0x160] sm:$0xff] }
  0x40   : > { %529 = vmatpush.msrb.mxu1 %v385_v43  ;;  %661 = vmatpush.msrb.mxu3 %v350_v44  ;;  %v2271_v43 = vld [vmem:[%s3353_s1 + $0x120] sm:$0xff]  ;;  %v326_v44 = vld [vmem:[%s2053_s7 + $0x8] sm:$0xff] }
  0x41   : > { %796 = vmatpush.msrb.mxu0 %v404_v45  ;;  %729 = vmatpush.msrb.mxu2 %v376_v46  ;;  %v289_v45 = vld [vmem:[%s3353_s1 + $0x60] sm:$0xff] }
  0x42   : > { %530 = vmatpush.msrb.mxu1 %v383_v47  ;;  %662 = vmatpush.msrb.mxu3 %v348_v48  ;;  %v357_v46 = vld [vmem:[%s2053_s7 + $0x100] sm:$0xff]  ;;  %v2288_v48 = vld [vmem:[%s3353_s1 + $0x178] sm:$0xff]  ;;  %s1403_s7 = sshll.u32 %s1400_s12, 4  ;;  %s3275_s7 = int_to_ptr.hbm [resolvable:$true] %s1403_s7 }
  0x43   : > { %797 = vmatpush.msrb.mxu0 %v402_v49  ;;  %730 = vmatpush.msrb.mxu2 %v374_v50  ;;  %v297_v47 = vld [vmem:[%s3353_s1 + $0xa0] sm:$0xff]  ;;  %v2293_v49 = vld [vmem:[%s3353_s1 + $0x138] sm:$0xff]  ;;  %s1865_s24 = sshra.s32 %s3275_s7, 4  ;;  %s1866_s24 = int_to_ptr.hbm [resolvable:$true] %s1865_s24 }
  0x44   : > { %531 = vmatpush.msrb.mxu1 %v381_v51  ;;  %1578 = vmatmul.msk.f32.gmra.mxu3 %vm407_vm1, %v2153_v52  ;;  %v292_v50 = vld [vmem:[%s3353_s1 + $0x78] sm:$0xff]  ;;  %p1872_p1 = scmp.lt.s32.totalorder %s1866_s24, %s3355_s3 }
  0x45   : > { %506 = vmatmul.f32.gmra.mxu1 %v2158_v53  ;;  %663 = vmatpush.msrb.mxu3 %v346_v54  ;;  %v300_v51 = vld [vmem:[%s3353_s1 + $0xb8] sm:$0xff]  ;;  %v2308_v54 = vld [vmem:[%s3353_s1 + $0x150] sm:$0xff] }
  0x46   : > { %482 = vmatmul.f32.gmra.mxu0 %v2164_v55  ;;  %532 = vmatpush.msrb.mxu1 %v379_v56  ;;  %v295_v56 = vld [vmem:[%s3353_s1 + $0x90] sm:$0xff] }
  0x47   : > { %1570 = vmatmul.msk.f32.gmra.mxu2 %vm407_vm1, %v2170_v57  ;;  %664 = vmatpush.msrb.mxu3 %v344_v58  ;;  %v303_v58 = vld [vmem:[%s3353_s1 + $0xd0] sm:$0xff] }
  0x48   : > { %533 = vmatpush.msrb.mxu1 %v377_v59  ;;  %731 = vmatpush.msrb.mxu2 %v372_v60  ;;  %v2322_v59 = vld [vmem:[%s3353_s1 + $0x168] sm:$0xff] }
  0x49   : > { %798 = vmatpush.msrb.mxu0 %v400_v61  ;;  %665 = vmatpush.msrb.mxu3 %v342_v62  ;;  %v298_v60 = vld [vmem:[%s3353_s1 + $0xa8] sm:$0xff]  ;;  %v284_v62 = vld [vmem:[%s3353_s1 + $0x38] sm:$0xff] }
  0x4a   : > { %534 = vmatpush.msrb.mxu1 %v375_v63  ;;  %732 = vmatpush.msrb.mxu2 %v370_v0  ;;  %v278_v61 = vld [vmem:[%s3353_s1 + $0x8] sm:$0xff] }
  0x4b   : > { %666 = vmatpush.msrb.mxu3 %v340_v1  ;;  %799 = vmatpush.msrb.mxu0 %v398_v2  ;;  %v302_v0 = vld [vmem:[%s3353_s1 + $0xc8] sm:$0xff] }
  0x4c   : > { %1579 = vmatmul.msk.f32.gmra.mxu3 %vm407_vm1, %v2190_v3  ;;  %535 = vmatpush.msrb.mxu1 %v373_v4 }
  0x4d   : > { %509 = vmatmul.f32.gmra.mxu1 %v2196_v5  ;;  %733 = vmatpush.msrb.mxu2 %v368_v6  ;;  %v305_v6 = vld [vmem:[%s3353_s1 + $0xe0] sm:$0xff] }
  0x4e   : > { %485 = vmatmul.f32.gmra.mxu0 %v2202_v7  ;;  %536 = vmatpush.msrb.mxu1 %v371_v8 }
  0x4f   : > { %1571 = vmatmul.msk.f32.gmra.mxu2 %vm407_vm1, %v2208_v9  ;;  %667 = vmatpush.msrb.mxu3 %v338_v10  ;;  %v308_v10 = vld [vmem:[%s3353_s1 + $0xf8] sm:$0xff] }
  0x50   : > { %537 = vmatpush.msrb.mxu1 %v369_v11  ;;  %734 = vmatpush.msrb.mxu2 %v366_v12 }
  0x51   : > { %668 = vmatpush.msrb.mxu3 %v336_v13  ;;  %800 = vmatpush.msrb.mxu0 %v396_v14  ;;  %v311_v14 = vld [vmem:[%s3353_s1 + $0x110] sm:$0xff] }
  0x52   : > { %538 = vmatpush.msrb.mxu1 %v367_v15  ;;  %735 = vmatpush.msrb.mxu2 %v364_v16 }
  0x53   : > { %669 = vmatpush.msrb.mxu3 %v334_v17  ;;  %801 = vmatpush.msrb.mxu0 %v394_v19  ;;  %v314_v19 = vld [vmem:[%s3353_s1 + $0x128] sm:$0xff] }
  0x54   : > { %1580 = vmatmul.msk.f32.gmra.mxu3 %vm407_vm1, %v2228_v20  ;;  %539 = vmatpush.msrb.mxu1 %v365_v21 }
  0x55   : > { %512 = vmatmul.f32.gmra.mxu1 %v2234_v22  ;;  %670 = vmatpush.msrb.mxu3 %v332_v24 }
  0x56   : > { %488 = vmatmul.f32.gmra.mxu0 %v2240_v25  ;;  %736 = vmatpush.msrb.mxu2 %v362_v26 }
  0x57   : > { %1572 = vmatmul.msk.f32.gmra.mxu2 %vm407_vm1, %v2246_v27  ;;  %540 = vmatpush.msrb.mxu1 %v363_v28 }
  0x58   : > { %671 = vmatpush.msrb.mxu3 %v330_v30  ;;  %737 = vmatpush.msrb.mxu2 %v360_v31  ;;  %v320_v30 = vld [vmem:[%s3353_s1 + $0x158] sm:$0xff] }
  0x59   : > { %541 = vmatpush.msrb.mxu1 %v361_v32  ;;  %802 = vmatpush.msrb.mxu0 %v392_v33 }
  0x5a   : > { %672 = vmatpush.msrb.mxu3 %v328_v34  ;;  %738 = vmatpush.msrb.mxu2 %v358_v35  ;;  %v323_v34 = vld [vmem:[%s3353_s1 + $0x170] sm:$0xff] }
  0x5b   : > { %542 = vmatpush.msrb.mxu1 %v359_v36  ;;  %803 = vmatpush.msrb.mxu0 %v390_v39 }
  0x5c   : > { %1581 = vmatmul.msk.f32.gmra.mxu3 %vm407_vm1, %v2266_v42 }
  0x5d   : > { %515 = vmatmul.f32.gmra.mxu1 %v2271_v43  ;;  %673 = vmatpush.msrb.mxu3 %v326_v44 }
  0x5e   : > { %491 = vmatmul.f32.gmra.mxu0 %v289_v45  ;;  %543 = vmatpush.msrb.mxu1 %v357_v46 }
  0x5f   : > { %1573 = vmatmul.msk.f32.gmra.mxu2 %vm407_vm1, %v297_v47 }
  0x64   : > { %1582 = vmatmul.msk.f32.gmra.mxu3 %vm407_vm1, %v2288_v48 }
  0x65   : > { %518 = vmatmul.f32.gmra.mxu1 %v2293_v49 }
  0x66   : > { %494 = vmatmul.f32.gmra.mxu0 %v292_v50 }
  0x67   : > { %1574 = vmatmul.msk.f32.gmra.mxu2 %vm407_vm1, %v300_v51 }
  0x6c   : > { %674 = vmatmul.f32.vlgmr.msrb.gmra.mxu3 %v2126_v40  ;;  %v281_v40 = vld [vmem:[%s3353_s1 + $0x20] sm:$0xff] }
  0x6d   : > { %521 = vmatmul.f32.gmra.mxu1 %v2308_v54 }
  0x6e   : > { %497 = vmatmul.f32.gmra.mxu0 %v295_v56 }
  0x6f   : > { %1575 = vmatmul.msk.f32.gmra.mxu2 %vm407_vm1, %v303_v58 }
  0x74   : > { %677 = vmatmul.f32.gmra.mxu3 %v2164_v55  ;;  %v287_v55 = vld [vmem:[%s3353_s1 + $0x50] sm:$0xff] }
  0x75   : > { %524 = vmatmul.f32.gmra.mxu1 %v2322_v59 }
  0x76   : > { %500 = vmatmul.f32.gmra.mxu0 %v298_v60 }
  0x77   : > { %739 = vmatmul.f32.vlgmr.msrb.gmra.mxu2 %v278_v61 }
  0x7c   : > { %680 = vmatmul.f32.gmra.mxu3 %v2202_v7 }
  0x7d   : > { %544 = vmatmul.f32.vlgmr.msrb.gmra.mxu1 %v278_v61 }
  0x7e   : > { %1584 = vmatmul.msk.f32.vlgmr.msrb.gmra.mxu0 %vm407_vm1, %v2078_v18  ;;  %v290_v18 = vld [vmem:[%s3353_s1 + $0x68] sm:$0xff] }
  0x7f   : > { %742 = vmatmul.f32.gmra.mxu2 %v281_v40 }
  0x84   : > { %683 = vmatmul.f32.gmra.mxu3 %v2240_v25  ;;  %v317_v25 = vld [vmem:[%s3353_s1 + $0x140] sm:$0xff] }
  0x85   : > { %547 = vmatmul.f32.gmra.mxu1 %v281_v40 }
  0x86   : > { %1585 = vmatmul.msk.f32.gmra.mxu0 %vm407_vm1, %v2101_v29  ;;  %v293_v29 = vld [vmem:[%s3353_s1 + $0x80] sm:$0xff] }
  0x87   : > { %745 = vmatmul.f32.gmra.mxu2 %v284_v62 }
  0x8c   : > { %686 = vmatmul.f32.gmra.mxu3 %v289_v45 }
  0x8d   : > { %550 = vmatmul.f32.gmra.mxu1 %v284_v62 }
  0x8e   : > { %1586 = vmatmul.msk.f32.gmra.mxu0 %vm407_vm1, %v2131_v41  ;;  %v296_v41 = vld [vmem:[%s3353_s1 + $0x98] sm:$0xff] }
  0x8f   : > { %748 = vmatmul.f32.gmra.mxu2 %v287_v55 }
  0x94   : > { %689 = vmatmul.f32.gmra.mxu3 %v292_v50 }
  0x95   : > { %553 = vmatmul.f32.gmra.mxu1 %v287_v55 }
  0x96   : > { %1587 = vmatmul.msk.f32.gmra.mxu0 %vm407_vm1, %v2170_v57  ;;  %v299_v57 = vld [vmem:[%s3353_s1 + $0xb0] sm:$0xff] }
  0x97   : > { %751 = vmatmul.f32.gmra.mxu2 %v290_v18 }
  0x9c   : > { %692 = vmatmul.f32.gmra.mxu3 %v295_v56 }
  0x9d   : > { %556 = vmatmul.f32.gmra.mxu1 %v290_v18 }
  0x9e   : > { %1588 = vmatmul.msk.f32.gmra.mxu0 %vm407_vm1, %v2208_v9 }
  0x9f   : > { %754 = vmatmul.f32.gmra.mxu2 %v293_v29 }
  0xa4   : > { %695 = vmatmul.f32.gmra.mxu3 %v298_v60 }
  0xa5   : > { %559 = vmatmul.f32.gmra.mxu1 %v293_v29 }
  0xa6   : > { %1589 = vmatmul.msk.f32.gmra.mxu0 %vm407_vm1, %v2246_v27 }
  0xa7   : > { %757 = vmatmul.f32.gmra.mxu2 %v296_v41 }
  0xac   : > { %698 = vmatmul.f32.gmra.mxu3 %v2120_v38 }
  0xad   : > { %562 = vmatmul.f32.gmra.mxu1 %v296_v41 }
  0xae   : > { %1590 = vmatmul.msk.f32.gmra.mxu0 %vm407_vm1, %v297_v47 }
  0xaf   : > { %760 = vmatmul.f32.gmra.mxu2 %v299_v57 }
  0xb2   : > { %v2369_v63 = vpop.f32.mrf.mxu2 }
  0xb4   : > { %701 = vmatmul.f32.gmra.mxu3 %v2158_v53 }
  0xb5   : > { %565 = vmatmul.f32.gmra.mxu1 %v299_v57 }
  0xb6   : > { %1591 = vmatmul.msk.f32.gmra.mxu0 %vm407_vm1, %v300_v51  ;;  %v2376_v1 = vpop.f32.mrf.mxu3 }
  0xb7   : > { %763 = vmatmul.f32.gmra.mxu2 %v302_v0 }
  0xba   : > { %v2378_v2 = vpop.f32.mrf.mxu1  ;;  %v2380_v38 = vpop.f32.mrf.mxu2 }
  0xbb   : > { %v2382_v4 = vpop.f32.mrf.mxu0 }
  0xbc   : > { %704 = vmatmul.f32.gmra.mxu3 %v2196_v5 }
  0xbd   : > { %568 = vmatmul.f32.gmra.mxu1 %v302_v0 }
  0xbe   : > { %1592 = vmatmul.msk.f32.gmra.mxu0 %vm407_vm1, %v303_v58 }
  0xbf   : > { %766 = vmatmul.f32.gmra.mxu2 %v305_v6  ;;  %v2389_v53 = vpop.f32.mrf.mxu3 }
  0xc2   : > { %v2391_v7 = vpop.f32.mrf.mxu1  ;;  %v2393_v8 = vpop.f32.mrf.mxu2 }
  0xc3   : > { %v2395_v9 = vpop.f32.mrf.mxu0 }
  0xc4   : > { %707 = vmatmul.f32.gmra.mxu3 %v2234_v22 }
  0xc5   : > { %571 = vmatmul.f32.gmra.mxu1 %v305_v6 }
  0xc6   : > { %1593 = vmatmul.msk.f32.gmra.mxu0 %vm407_vm1, %v2089_v23 }
  0xc7   : > { %769 = vmatmul.f32.gmra.mxu2 %v308_v10  ;;  %v2403_v5 = vpop.f32.mrf.mxu3 }
  0xca   : > { %v2405_v11 = vpop.f32.mrf.mxu1  ;;  %v2407_v12 = vpop.f32.mrf.mxu2 }
  0xcb   : > { %v2409_v13 = vpop.f32.mrf.mxu0 }
  0xcc   : > { %710 = vmatmul.f32.gmra.mxu3 %v2271_v43 }
  0xcd   : > { %574 = vmatmul.f32.gmra.mxu1 %v308_v10 }
  0xce   : > { %1594 = vmatmul.msk.f32.gmra.mxu0 %vm407_vm1, %v2115_v37 }
  0xcf   : > { %772 = vmatmul.f32.gmra.mxu2 %v311_v14  ;;  %v2417_v23 = vpop.f32.mrf.mxu3 }
  0xd2   : > { %v2419_v15 = vpop.f32.mrf.mxu1  ;;  %v2421_v16 = vpop.f32.mrf.mxu2 }
  0xd3   : > { %v2423_v17 = vpop.f32.mrf.mxu0 }
  0xd4   : > { %713 = vmatmul.f32.gmra.mxu3 %v2293_v49 }
  0xd5   : > { %577 = vmatmul.f32.gmra.mxu1 %v311_v14 }
  0xd6   : > { %1595 = vmatmul.msk.f32.gmra.mxu0 %vm407_vm1, %v2153_v52 }
  0xd7   : > { %775 = vmatmul.f32.gmra.mxu2 %v314_v19  ;;  %v2431_v37 = vpop.f32.mrf.mxu3 }
  0xda   : > { %v2433_v21 = vpop.f32.mrf.mxu1  ;;  %v2435_v22 = vpop.f32.mrf.mxu2 }
  0xdb   : > { %v2437_v24 = vpop.f32.mrf.mxu0 }
  0xdc   : > { %716 = vmatmul.f32.gmra.mxu3 %v2308_v54 }
  0xdd   : > { %580 = vmatmul.f32.gmra.mxu1 %v314_v19 }
  0xde   : > { %1596 = vmatmul.msk.f32.gmra.mxu0 %vm407_vm1, %v2190_v3 }
  0xdf   : > { %778 = vmatmul.f32.gmra.mxu2 %v317_v25  ;;  %v2445_v52 = vpop.f32.mrf.mxu3 }
  0xe2   : > { %v2447_v26 = vpop.f32.mrf.mxu1  ;;  %v2449_v27 = vpop.f32.mrf.mxu2 }
  0xe3   : > { %v2451_v28 = vpop.f32.mrf.mxu0 }
  0xe4   : > { %719 = vmatmul.f32.gmra.mxu3 %v2322_v59 }
  0xe5   : > { %583 = vmatmul.f32.gmra.mxu1 %v317_v25 }
  0xe6   : > { %1597 = vmatmul.msk.f32.gmra.mxu0 %vm407_vm1, %v2228_v20 }
  0xe7   : > { %781 = vmatmul.f32.gmra.mxu2 %v320_v30  ;;  %v2459_v3 = vpop.f32.mrf.mxu3 }
  0xea   : > { %v2461_v31 = vpop.f32.mrf.mxu1  ;;  %v2463_v32 = vpop.f32.mrf.mxu2 }
  0xeb   : > { %v2465_v33 = vpop.f32.mrf.mxu0 }
  0xed   : > { %586 = vmatmul.f32.gmra.mxu1 %v320_v30 }
  0xee   : > { %1598 = vmatmul.msk.f32.gmra.mxu0 %vm407_vm1, %v2266_v42 }
  0xef   : > { %784 = vmatmul.f32.gmra.mxu2 %v323_v34  ;;  %v675_v35 = vpop.f32.mrf.mxu3 }
  0xf2   : > { %v2472_v20 = vpop.f32.mrf.mxu1  ;;  %v2474_v36 = vpop.f32.mrf.mxu2 }
  0xf3   : > { %v2476_v39 = vpop.f32.mrf.mxu0 }
  0xf5   : > { %589 = vmatmul.f32.gmra.mxu1 %v323_v34 }
  0xf6   : > { %1599 = vmatmul.msk.f32.gmra.mxu0 %vm407_vm1, %v2288_v48 }
  0xf7   : > { %v678_v43 = vpop.f32.mrf.mxu3 }
  0xfa   : > { %v545_v44 = vpop.f32.mrf.mxu1  ;;  %v740_v45 = vpop.f32.mrf.mxu2 }
  0xfb   : > { %v546_v46 = vadd.f32 %v545_v44, %v2382_v4  ;;  %v741_v47 = vadd.f32 %v740_v45, %v675_v35  ;;  %v805_v49 = vpop.f32.mrf.mxu0 }
  0xfd   : > { %v611_v42 = vadd.f32 %v2369_v63, %v546_v46  ;;  %v806_v50 = vadd.f32 %v805_v49, %v741_v47 }
  0xff   : > { %v681_v51 = vpop.f32.mrf.mxu3  ;;  %v1600_v54 = vmul.f32 -1.442695, %v611_v42  ;;  %v1601_v56 = vmul.f32 -1.442695, %v806_v50 }
 0x101   : > { %1723 = vpow2.f32 %v1600_v54 }
 0x102   : > { %v548_v58 = vpop.f32.mrf.mxu1  ;;  %v743_v59 = vpop.f32.mrf.mxu2  ;;  %1725 = vpow2.f32 %v1601_v56 }
 0x103   : > { %v549_v60 = vadd.f32 %v548_v58, %v2395_v9  ;;  %v744_v61 = vadd.f32 %v743_v59, %v678_v43  ;;  %v808_v40 = vpop.f32.mrf.mxu0 }
 0x105   : > { %v614_v48 = vadd.f32 %v2380_v38, %v549_v60  ;;  %v809_v62 = vadd.f32 %v808_v40, %v744_v61 }
 0x107   : > { %v1602_v55 = vmul.f32 -1.442695, %v614_v48  ;;  %v684_v18 = vpop.f32.mrf.mxu3  ;;  %v1603_v29 = vmul.f32 -1.442695, %v809_v62  ;;  %v1724_v41 = vpop.eup %1723 }
 0x108   : > { %v1726_v0 = vpop.eup %1725  ;;  %v2485_v10 = vadd.f32 1.0, %v1724_v41 }
 0x109   : > { %1727 = vpow2.f32 %v1602_v55  ;;  %v2488_v19 = vadd.f32 1.0, %v1726_v0 }
 0x10a   : > { %v551_v57 = vpop.f32.mrf.mxu1  ;;  %v746_v63 = vpop.f32.mrf.mxu2  ;;  %1729 = vpow2.f32 %v1603_v29  ;;  %vm890_vm2 = vweird.f32 %v2485_v10 }
 0x10b   : > { %v552_v4 = vadd.f32 %v551_v57, %v2409_v13  ;;  %v811_v6 = vpop.f32.mrf.mxu0  ;;  %v747_v9 = vadd.f32 %v746_v63, %v681_v51  ;;  %1731 = vrcp.f32 %v2485_v10  ;;  %vm905_vm3 = vweird.f32 %v2488_v19 }
 0x10c   : > { %1733 = vrcp.f32 %v2488_v19 }
 0x10d   : > { %v617_v14 = vadd.f32 %v2393_v8, %v552_v4  ;;  %v812_v38 = vadd.f32 %v811_v6, %v747_v9  ;;  %v896_v4 = vand.u32 2147483648, %v2485_v10  ;;  %v911_v9 = vand.u32 2147483648, %v2488_v19 }
 0x10f   : > { %v687_v25 = vpop.f32.mrf.mxu3  ;;  %v1728_v30 = vpop.eup %1727  ;;  %v1604_v34 = vmul.f32 -1.442695, %v617_v14  ;;  %v1605_v49 = vmul.f32 -1.442695, %v812_v38 }
 0x110   : > { %v1730_v35 = vpop.eup %1729  ;;  %v2492_v44 = vadd.f32 1.0, %v1728_v30 }
 0x111   : > { %v2494_v46 = vadd.f32 1.0, %v1730_v35  ;;  %1735 = vpow2.f32 %v1604_v34  ;;  %v2497_v50 = vpop.eup %1731  ;;  %v894_v34 = vand.u32 2147483647, %v2485_v10 }
 0x112   : > { %v554_v43 = vpop.f32.mrf.mxu1  ;;  %v749_v13 = vpop.f32.mrf.mxu2  ;;  %1737 = vrcp.f32 %v2492_v44  ;;  %vm891_vm5 = vweird.f32 %v2497_v50  ;;  %vm920_vm7 = vweird.f32 %v2492_v44 }
 0x113   : > { %v814_v45 = vpop.f32.mrf.mxu0  ;;  %v555_v8 = vadd.f32 %v554_v43, %v2423_v17  ;;  %v750_v47 = vadd.f32 %v749_v13, %v684_v18  ;;  %v2500_v54 = vpop.eup %1733  ;;  %1739 = vrcp.f32 %v2494_v46  ;;  %v886_v17 = vmul.f32 %v2497_v50, %v2485_v10  ;;  %vm2574_vm10 = vmor %vm890_vm2, %vm891_vm5 }
 0x114   : > { %1741 = vpow2.f32 %v1605_v49  ;;  %v901_v61 = vmul.f32 %v2500_v54, %v2488_v19  ;;  %v909_v49 = vand.u32 2147483647, %v2488_v19  ;;  %vm2539_vm4 = vcmp.eq.f32.partialorder %v894_v34, 8.507059e+37 }
 0x115   : > { %v815_v42 = vadd.f32 %v814_v45, %v750_v47  ;;  %v620_v56 = vadd.f32 %v2407_v12, %v555_v8  ;;  %v887_v0 = vsub.f32 1.0, %v886_v17  ;;  %v2530_v8 = vor.u32 1.1754944e-38, %v896_v4 }
 0x116   : > { %v902_v6 = vsub.f32 1.0, %v901_v61  ;;  %vm906_vm6 = vweird.f32 %v2500_v54  ;;  %vm2553_vm8 = vcmp.eq.f32.partialorder %v909_v49, 8.507059e+37  ;;  %vm935_vm9 = vweird.f32 %v2494_v46 }
 0x117   : > { %v690_v51 = vpop.f32.mrf.mxu3  ;;  %v1736_v58 = vpop.eup %1735  ;;  %v1606_v55 = vmul.f32 -1.442695, %v620_v56  ;;  %v888_v45 = vmul.f32 %v2497_v50, %v887_v0  ;;  %v2535_v56 = vor.u32 1.1754944e-38, %v911_v9  ;;  %v939_v49 = vand.u32 2147483647, %v2494_v46  ;;  %vm2603_vm12 = vmor %vm905_vm3, %vm906_vm6 }
 0x118   : > { %v2509_v18 = vpop.eup %1737  ;;  %v2511_v29 = vadd.f32 1.0, %v1736_v58 }
 0x119   : > { %v2513_v12 = vpop.eup %1739  ;;  %v916_v14 = vmul.f32 %v2509_v18, %v2492_v44  ;;  %1743 = vpow2.f32 %v1606_v55  ;;  %vm921_vm13 = vweird.f32 %v2509_v18  ;;  %vm940_vm3 = vcmp.eq.f32.partialorder %v939_v49, 8.507059e+37 }
 0x11a   : > { %v557_v59 = vpop.f32.mrf.mxu1  ;;  %v752_v60 = vpop.f32.mrf.mxu2  ;;  %v931_v30 = vmul.f32 %v2513_v12, %v2494_v46  ;;  %1745 = vrcp.f32 %v2511_v29  ;;  %vm936_vm14 = vweird.f32 %v2513_v12  ;;  %vm2625_vm15 = vmor %vm920_vm7, %vm921_vm13  ;;  %vm950_vm1 = vweird.f32 %v2511_v29 }
 0x11b   : > { %v558_v40 = vadd.f32 %v557_v59, %v2437_v24  ;;  %v753_v48 = vadd.f32 %v752_v60, %v687_v25  ;;  %v817_v62 = vpop.f32.mrf.mxu0  ;;  %v1742_v63 = vpop.eup %1741  ;;  %v917_v58 = vsub.f32 1.0, %v916_v14  ;;  %v926_v59 = vand.u32 2147483648, %v2492_v44  ;;  %vm2639_vm0 = vmor %vm935_vm9, %vm936_vm14 }
 0x11c   : > { %v2527_v35 = vadd.f32 1.0, %v1742_v63  ;;  %v932_v60 = vsub.f32 1.0, %v931_v30  ;;  %v924_v63 = vand.u32 2147483647, %v2492_v44 }
 0x11d   : > { %v623_v41 = vadd.f32 %v2421_v16, %v558_v40  ;;  %v818_v57 = vadd.f32 %v817_v62, %v753_v48  ;;  %v1607_v16 = vmul.f32 -1.442695, %v815_v42  ;;  %v903_v42 = vmul.f32 %v2500_v54, %v902_v6 }
 0x11e   : > { %v2558_v4 = vor.u32 1.1754944e-38, %v926_v59  ;;  %v941_v6 = vand.u32 2147483648, %v2494_v46  ;;  %v918_v14 = vmul.f32 %v2509_v18, %v917_v58  ;;  %v956_v58 = vand.u32 2147483648, %v2511_v29 }
 0x11f   : > { %v2518_v24 = vpop.f32.mrf.mxu3  ;;  %v1608_v38 = vmul.f32 -1.442695, %v623_v41  ;;  %v1609_v25 = vmul.f32 -1.442695, %v818_v57  ;;  %v1744_v48 = vpop.eup %1743  ;;  %v889_v41 = vadd.f32 %v2497_v50, %v888_v45  ;;  %vm2593_vm11 = vcmp.eq.f32.partialorder %v924_v63, 8.507059e+37 }
 0x120   : > { %v2547_v62 = vpop.eup %1745  ;;  %v919_v19 = vadd.f32 %v2509_v18, %v918_v14 }
 0x121   : > { %1747 = vpow2.f32 %v1608_v38  ;;  %v933_v38 = vmul.f32 %v2513_v12, %v932_v60  ;;  %v946_v34 = vmul.f32 %v2547_v62, %v2511_v29  ;;  %v893_v60 = vsel %vm2574_vm10, %v2497_v50, %v889_v41 }
 0x122   : > { %v560_v43 = vpop.f32.mrf.mxu1  ;;  %v755_v13 = vpop.f32.mrf.mxu2  ;;  %1749 = vpow2.f32 %v1609_v25  ;;  %v2566_v25 = vadd.f32 1.0, %v1744_v48  ;;  %v971_v50 = vand.u32 2147483648, %v2527_v35  ;;  %vm951_vm2 = vweird.f32 %v2547_v62 }
 0x123   : > { %v820_v47 = vpop.f32.mrf.mxu0  ;;  %1751 = vpow2.f32 %v1607_v16  ;;  %v561_v17 = vadd.f32 %v560_v43, %v2451_v28  ;;  %v756_v61 = vadd.f32 %v755_v13, %v690_v51  ;;  %v947_v41 = vsub.f32 1.0, %v946_v34 }
 0x124   : > { %1753 = vrcp.f32 %v2527_v35  ;;  %v2644_v44 = vor.u32 1.1754944e-38, %v971_v50 }
 0x125   : > { %v626_v55 = vadd.f32 %v2435_v22, %v561_v17  ;;  %v821_v28 = vadd.f32 %v820_v47, %v756_v61  ;;  %v904_v22 = vadd.f32 %v2500_v54, %v903_v42  ;;  %v948_v57 = vmul.f32 %v2547_v62, %v947_v41 }
 0x127   : > { %v2550_v51 = vpop.f32.mrf.mxu3  ;;  %v1748_v0 = vpop.eup %1747  ;;  %v1610_v13 = vmul.f32 -1.442695, %v626_v55  ;;  %v1611_v10 = vmul.f32 -1.442695, %v821_v28  ;;  %v908_v55 = vsel %vm2603_vm12, %v2500_v54, %v904_v22  ;;  %v934_v28 = vadd.f32 %v2513_v12, %v933_v38 }
 0x128   : > { %v1750_v9 = vpop.eup %1749  ;;  %v2568_v30 = vadd.f32 1.0, %v1748_v0  ;;  %v898_v0 = vsel %vm2539_vm4, %v2530_v8, %v893_v60  ;;  %v942_v54 = vor.u32 1.1754944e-38, %v941_v6  ;;  %v2629_v22 = vor.u32 1.1754944e-38, %v956_v58  ;;  %v1320_v8 = vld [vmem:[%s2588_s26 + $0x18] sm:$0xff]  ;;  %vm2710_vm4 = vmor %vm950_vm1, %vm951_vm2 }
 0x129   : > { %v2580_v43 = vadd.f32 1.0, %v1750_v9  ;;  %v1752_v42 = vpop.eup %1751  ;;  %v1317_v9 = vld [vmem:[%s2588_s26] sm:$0xff]  ;;  %v913_v34 = vsel %vm2553_vm8, %v2535_v56, %v908_v55  ;;  %v923_v58 = vsel %vm2625_vm15, %v2509_v18, %v919_v19  ;;  %v986_v18 = vand.u32 2147483648, %v2566_v25 }
 0x12a   : > { %v563_v45 = vpop.f32.mrf.mxu1  ;;  %v758_v47 = vpop.f32.mrf.mxu2  ;;  %1755 = vrcp.f32 %v2568_v30  ;;  %v2617_v63 = vadd.f32 1.0, %v1752_v42  ;;  %v2655_v46 = vmul.f32 %v1317_v9, %v898_v0  ;;  %vm1042_vm6 = vweird.f32 %v2568_v30 }
 0x12b   : > { %v823_v59 = vpop.f32.mrf.mxu0  ;;  %v2597_v61 = vpop.eup %1753  ;;  %1757 = vrcp.f32 %v2580_v43  ;;  %v564_v40 = vadd.f32 %v563_v45, %v2465_v33  ;;  %v759_v6 = vadd.f32 %v758_v47, %v2518_v24  ;;  %v938_v33 = vsel %vm2639_vm0, %v2513_v12, %v934_v28 }
 0x12c   : > { %1759 = vrcp.f32 %v2566_v25  ;;  %v961_v14 = vmul.f32 %v2597_v61, %v2527_v35  ;;  %v1001_v19 = vand.u32 2147483648, %v2617_v63  ;;  %v943_v41 = vsel %vm940_vm3, %v942_v54, %v938_v33 }
 0x12d   : > { %1761 = vpow2.f32 %v1610_v13  ;;  %v1318_v13 = vld [vmem:[%s2588_s26 + $0x8] sm:$0xff]  ;;  %v629_v56 = vadd.f32 %v2449_v27, %v564_v40  ;;  %v824_v45 = vadd.f32 %v823_v59, %v759_v6  ;;  %v928_v27 = vsel %vm2593_vm11, %v2558_v4, %v923_v58  ;;  %v1319_v59 = vld [vmem:[%s2588_s26 + $0x10] sm:$0xff] }
 0x12e   : > { %1763 = vpow2.f32 %v1611_v10  ;;  %v962_v48 = vsub.f32 1.0, %v961_v14  ;;  %v2671_v12 = vmul.f32 %v1318_v13, %v913_v34  ;;  %v949_v4 = vadd.f32 %v2547_v62, %v948_v57 }
 0x12f   : > { %v2633_v38 = vpop.f32.mrf.mxu3  ;;  %1765 = vrcp.f32 %v2617_v63  ;;  %v1612_v28 = vmul.f32 -1.442695, %v629_v56  ;;  %v1613_v6 = vmul.f32 -1.442695, %v824_v45  ;;  %v2694_v34 = vor.u32 1.1754944e-38, %v986_v18 }
 0x130   : > { %v2652_v42 = vpop.eup %1755  ;;  %v2690_v17 = vmul.f32 %v2597_v61, %v962_v48  ;;  %v2696_v13 = vmul.f32 %v1319_v59, %v928_v27  ;;  %v2704_v56 = vmul.f32 %v1320_v8, %v943_v41  ;;  %vm966_vm5 = vweird.f32 %v2597_v61 }
 0x131   : > { %v2663_v24 = vpop.eup %1757  ;;  %v1038_v9 = vmul.f32 %v2652_v42, %v2568_v30  ;;  %1767 = vpow2.f32 %v1612_v28  ;;  %3373 = vst [vmem:[#allocation8_spill] sm:$0xff] %v2694_v34  ;;  %v954_v28 = vand.u32 2147483647, %v2511_v29  ;;  %vm1057_vm7 = vweird.f32 %v2580_v43 }
 0x132   : > { %v566_v47 = vpop.f32.mrf.mxu1  ;;  %v761_v10 = vpop.f32.mrf.mxu2  ;;  %v1053_v16 = vmul.f32 %v2663_v24, %v2580_v43  ;;  %vm965_vm8 = vweird.f32 %v2527_v35  ;;  %v1063_v57 = vand.u32 2147483648, %v2580_v43  ;;  %vm1043_vm10 = vweird.f32 %v2652_v42 }
 0x133   : > { %v2668_v60 = vpop.eup %1759  ;;  %v826_v50 = vpop.f32.mrf.mxu0  ;;  %v567_v49 = vadd.f32 %v566_v47, %v2476_v39  ;;  %v2700_v39 = vor.u32 1.1754944e-38, %v1001_v19  ;;  %v762_v33 = vadd.f32 %v761_v10, %v2550_v51  ;;  %v1039_v45 = vsub.f32 1.0, %v1038_v9  ;;  %vm2770_vm13 = vmor %vm1042_vm6, %vm1043_vm10 }
 0x134   : > { %v1762_v55 = vpop.eup %1761  ;;  %v976_v54 = vmul.f32 %v2668_v60, %v2566_v25  ;;  %v1054_v47 = vsub.f32 1.0, %v1053_v16  ;;  %v1048_v51 = vand.u32 2147483648, %v2568_v30  ;;  %v953_v19 = vsel %vm2710_vm4, %v2547_v62, %v949_v4  ;;  %vm2809_vm0 = vmor %vm965_vm8, %vm966_vm5 }
 0x135   : > { %v1764_v0 = vpop.eup %1763  ;;  %v2682_v14 = vadd.f32 1.0, %v1762_v55  ;;  %3374 = vst [vmem:[#allocation9_spill] sm:$0xff] %v2700_v39  ;;  %v632_v48 = vadd.f32 %v2463_v32, %v567_v49  ;;  %v1046_v32 = vand.u32 2147483647, %v2568_v30  ;;  %v1061_v9 = vand.u32 2147483647, %v2580_v43 }
 0x136   : > { %v2686_v40 = vadd.f32 1.0, %v1764_v0  ;;  %v2698_v58 = vpop.eup %1765  ;;  %v977_v27 = vsub.f32 1.0, %v976_v54  ;;  %v827_v16 = vadd.f32 %v826_v50, %v762_v33  ;;  %v1040_v29 = vmul.f32 %v2652_v42, %v1039_v45 }
 0x137   : > { %1769 = vrcp.f32 %v2682_v14  ;;  %v2716_v18 = vpop.f32.mrf.mxu3  ;;  %v991_v59 = vmul.f32 %v2698_v58, %v2617_v63  ;;  %v1768_v0 = vpop.eup %1767  ;;  %v1055_v49 = vmul.f32 %v2663_v24, %v1054_v47  ;;  %v1049_v54 = vor.u32 1.1754944e-38, %v1048_v51 }
 0x138   : > { %1771 = vrcp.f32 %v2686_v40  ;;  %v2734_v8 = vadd.f32 1.0, %v1768_v0  ;;  %vm955_vm9 = vcmp.eq.f32.partialorder %v954_v28, 8.507059e+37  ;;  %vm2748_vm11 = vcmp.eq.f32.partialorder %v1046_v32, 8.507059e+37 }
 0x139   : > { %1773 = vpow2.f32 %v1613_v6  ;;  %v1614_v6 = vmul.f32 -1.442695, %v632_v48  ;;  %v992_v33 = vsub.f32 1.0, %v991_v59  ;;  %v958_v45 = vsel %vm955_vm9, %v2629_v22, %v953_v19  ;;  %v1321_v59 = vld [vmem:[%s2588_s26 + $0x20] sm:$0xff] }
 0x13a   : > { %v569_v10 = vpop.f32.mrf.mxu1  ;;  %v764_v55 = vpop.f32.mrf.mxu2  ;;  %1775 = vrcp.f32 %v2734_v8  ;;  %vm1058_vm12 = vweird.f32 %v2663_v24  ;;  %v1056_v28 = vadd.f32 %v2663_v24, %v1055_v49  ;;  %vm2774_vm14 = vcmp.eq.f32.partialorder %v1061_v9, 8.507059e+37 }
 0x13b   : > { %v829_v41 = vpop.f32.mrf.mxu0  ;;  %v570_v62 = vadd.f32 %v569_v10, %v2378_v2  ;;  %v2743_v2 = vmul.f32 %v2668_v60, %v977_v27  ;;  %v765_v51 = vadd.f32 %v764_v55, %v2633_v38  ;;  %v1041_v10 = vadd.f32 %v2652_v42, %v1040_v29  ;;  %vm2788_vm15 = vmor %vm1057_vm7, %vm1058_vm12 }
 0x13c   : > { %1777 = vpow2.f32 %v1614_v6  ;;  %v1615_v27 = vmul.f32 -1.442695, %v827_v16  ;;  %v2764_v38 = vmul.f32 %v2698_v58, %v992_v33  ;;  %v2782_v6 = vadd.f32 %v2597_v61, %v2690_v17 }
 0x13d   : > { %v2736_v4 = vpop.eup %1769  ;;  %v635_v39 = vadd.f32 %v2474_v36, %v570_v62  ;;  %v1064_v62 = vor.u32 1.1754944e-38, %v1063_v57  ;;  %v1078_v9 = vand.u32 2147483648, %v2682_v14  ;;  %v830_v33 = vadd.f32 %v829_v41, %v765_v51 }
 0x13e   : > { %v2740_v50 = vpop.eup %1771  ;;  %v1068_v22 = vmul.f32 %v2736_v4, %v2682_v14  ;;  %3379 = vst [vmem:[#allocation10_spill] sm:$0xff] %v2764_v38  ;;  %v969_v57 = vand.u32 2147483647, %v2527_v35  ;;  %v1045_v17 = vsel %vm2770_vm13, %v2652_v42, %v1041_v10  ;;  %v1060_v43 = vsel %vm2788_vm15, %v2663_v24, %v1056_v28 }
 0x13f   : > { %v1774_v47 = vpop.eup %1773  ;;  %v1616_v36 = vmul.f32 -1.442695, %v635_v39  ;;  %v1083_v19 = vmul.f32 %v2740_v50, %v2686_v40  ;;  %v705_v49 = vpop.f32.mrf.mxu3  ;;  %v1093_v38 = vand.u32 2147483648, %v2686_v40  ;;  %vm1072_vm1 = vweird.f32 %v2682_v14 }
 0x140   : > { %v2761_v32 = vadd.f32 1.0, %v1774_v47  ;;  %v2793_v47 = vmul.f32 %v1321_v59, %v958_v45  ;;  %v1069_v45 = vsub.f32 1.0, %v1068_v22  ;;  %v1076_v24 = vand.u32 2147483647, %v2682_v14 }
 0x141   : > { %1779 = vpow2.f32 %v1616_v36  ;;  %v2796_v36 = vpop.eup %1775  ;;  %v1084_v51 = vsub.f32 1.0, %v1083_v19  ;;  %v1091_v28 = vand.u32 2147483647, %v2686_v40  ;;  %v968_v35 = vsel %vm2809_vm0, %v2597_v61, %v2782_v6 }
 0x142   : > { %v572_v0 = vpop.f32.mrf.mxu1  ;;  %v767_v39 = vpop.f32.mrf.mxu2  ;;  %3386 = vst [vmem:[#allocation11_spill] sm:$0xff] %v2793_v47  ;;  %1781 = vpow2.f32 %v1615_v27  ;;  %v1098_v42 = vmul.f32 %v2796_v36, %v2734_v8  ;;  %v2823_v59 = vor.u32 1.1754944e-38, %v1078_v9  ;;  %vm1087_vm2 = vweird.f32 %v2686_v40 }
 0x143   : > { %v2778_v29 = vpop.f32.mrf.mxu0  ;;  %1783 = vrcp.f32 %v2761_v32  ;;  %v1778_v10 = vpop.eup %1777  ;;  %v1617_v19 = vmul.f32 -1.442695, %v830_v33  ;;  %v573_v55 = vadd.f32 %v572_v0, %v2391_v7  ;;  %v2829_v30 = vsel %vm2748_vm11, %v1049_v54, %v1045_v17 }
 0x144   : > { %v1099_v22 = vsub.f32 1.0, %v1098_v42  ;;  %v2833_v34 = vsel %vm2774_vm14, %v1064_v62, %v1060_v43  ;;  %v2835_v47 = vor.u32 1.1754944e-38, %v1093_v38  ;;  %vm2837_vm3 = vcmp.eq.f32.partialorder %v969_v57, 8.507059e+37 }
 0x145   : > { %v1070_v6 = vmul.f32 %v2736_v4, %v1069_v45  ;;  %vm1073_vm4 = vweird.f32 %v2736_v4  ;;  %v1085_v7 = vmul.f32 %v2740_v50, %v1084_v51  ;;  %v2844_v0 = vadd.f32 1.0, %v1778_v10 }
 0x146   : > { %vm1088_vm5 = vweird.f32 %v2740_v50  ;;  %vm1102_vm6 = vweird.f32 %v2734_v8  ;;  %v1106_v38 = vand.u32 2147483647, %v2734_v8  ;;  %v1100_v57 = vmul.f32 %v2796_v36, %v1099_v22  ;;  %vm2880_vm9 = vmor %vm1072_vm1, %vm1073_vm4 }
 0x147   : > { %v1780_v27 = vpop.eup %1779  ;;  %v1108_v17 = vand.u32 2147483648, %v2734_v8  ;;  %1785 = vpow2.f32 %v1617_v19  ;;  %v638_v43 = vadd.f32 %v2376_v1, %v573_v55  ;;  %vm2856_vm7 = vcmp.eq.f32.partialorder %v1076_v24, 8.507059e+37  ;;  %vm2899_vm12 = vmor %vm1087_vm2, %vm1088_vm5 }
 0x148   : > { %v1782_v9 = vpop.eup %1781  ;;  %v2849_v16 = vadd.f32 1.0, %v1780_v27  ;;  %vm2860_vm8 = vcmp.eq.f32.partialorder %v1091_v28, 8.507059e+37  ;;  %v768_v51 = vadd.f32 %v767_v39, %v2716_v18  ;;  %v708_v27 = vpop.f32.mrf.mxu3  ;;  %v1071_v22 = vadd.f32 %v2736_v4, %v1070_v6 }
 0x149   : > { %v2851_v33 = vpop.eup %1783  ;;  %v1086_v1 = vadd.f32 %v2740_v50, %v1085_v7  ;;  %v2870_v24 = vadd.f32 1.0, %v1782_v9  ;;  %v1618_v19 = vmul.f32 -1.442695, %v638_v43  ;;  %v1101_v39 = vadd.f32 %v2796_v36, %v1100_v57 }
 0x14a   : > { %v575_v54 = vpop.f32.mrf.mxu1  ;;  %v770_v48 = vpop.f32.mrf.mxu2  ;;  %1787 = vrcp.f32 %v2849_v16  ;;  %v1113_v28 = vmul.f32 %v2851_v33, %v2761_v32  ;;  %v833_v55 = vadd.f32 %v2778_v29, %v768_v51  ;;  %vm1103_vm10 = vweird.f32 %v2796_v36 }
 0x14b   : > { %v835_v62 = vpop.f32.mrf.mxu0  ;;  %v576_v42 = vadd.f32 %v575_v54, %v2405_v11  ;;  %v771_v10 = vadd.f32 %v770_v48, %v705_v49  ;;  %1789 = vrcp.f32 %v2844_v0  ;;  %vm2886_vm11 = vcmp.eq.f32.partialorder %v1106_v38, 8.507059e+37  ;;  %vm2920_vm13 = vmor %vm1102_vm6, %vm1103_vm10 }
 0x14c   : > { %1791 = vpow2.f32 %v1618_v19  ;;  %v1619_v29 = vmul.f32 -1.442695, %v833_v55  ;;  %v1075_v48 = vsel %vm2880_vm9, %v2736_v4, %v1071_v22  ;;  %v1114_v38 = vsub.f32 1.0, %v1113_v28 }
 0x14d   : > { %v641_v18 = vadd.f32 %v2389_v53, %v576_v42  ;;  %v2893_v53 = vsel %vm2837_vm3, %v2644_v44, %v968_v35  ;;  %v836_v7 = vadd.f32 %v835_v62, %v771_v10  ;;  %v1786_v54 = vpop.eup %1785  ;;  %v1090_v44 = vsel %vm2899_vm12, %v2740_v50, %v1086_v1 }
 0x14e   : > { %v1109_v35 = vor.u32 1.1754944e-38, %v1108_v17  ;;  %1793 = vrcp.f32 %v2870_v24  ;;  %v2912_v57 = vadd.f32 1.0, %v1786_v54  ;;  %v1121_v50 = vand.u32 2147483647, %v2761_v32 }
 0x14f   : > { %v1620_v6 = vmul.f32 -1.442695, %v641_v18  ;;  %1795 = vpow2.f32 %v1619_v29  ;;  %v1621_v62 = vmul.f32 -1.442695, %v836_v7  ;;  %v1123_v17 = vand.u32 2147483648, %v2761_v32 }
 0x150   : > { %v2910_v9 = vpop.eup %1787  ;;  %v1105_v10 = vsel %vm2920_vm13, %v2796_v36, %v1101_v39  ;;  %v2936_v1 = vsel %vm2856_vm7, %v2823_v59, %v1075_v48  ;;  %v2941_v28 = vsel %vm2860_vm8, %v2835_v47, %v1090_v44  ;;  %v1115_v36 = vmul.f32 %v2851_v33, %v1114_v38  ;;  %v711_v41 = vpop.f32.mrf.mxu3 }
 0x151   : > { %v2914_v51 = vpop.eup %1789  ;;  %v1190_v42 = vmul.f32 %v2910_v9, %v2849_v16  ;;  %1797 = vpow2.f32 %v1620_v6  ;;  %v2953_v45 = vsel %vm2886_vm11, %v1109_v35, %v1105_v10  ;;  %v1198_v39 = vand.u32 2147483647, %v2849_v16 }
 0x152   : > { %v578_v40 = vpop.f32.mrf.mxu1  ;;  %v773_v61 = vpop.f32.mrf.mxu2  ;;  %1799 = vrcp.f32 %v2912_v57  ;;  %v2946_v18 = vmul.f32 %v2914_v51, %v2844_v0  ;;  %vm1194_vm14 = vweird.f32 %v2849_v16  ;;  %vm1195_vm15 = vweird.f32 %v2910_v9 }
 0x153   : > { %v838_v43 = vpop.f32.mrf.mxu0  ;;  %v579_v8 = vadd.f32 %v578_v40, %v2419_v15  ;;  %v774_v22 = vadd.f32 %v773_v61, %v708_v27  ;;  %v1191_v19 = vsub.f32 1.0, %v1190_v42  ;;  %1801 = vpow2.f32 %v1621_v62  ;;  %v1792_v55 = vpop.eup %1791  ;;  %vm2981_vm0 = vmor %vm1194_vm14, %vm1195_vm15 }
 0x154   : > { %v2949_v59 = vpop.eup %1793  ;;  %v2955_v47 = vadd.f32 1.0, %v1792_v55  ;;  %v2972_v4 = vadd.f32 %v2851_v33, %v1115_v36  ;;  %vm1199_vm1 = vcmp.eq.f32.partialorder %v1198_v39, 8.507059e+37  ;;  %vm1209_vm2 = vweird.f32 %v2912_v57 }
 0x155   : > { %v644_v15 = vadd.f32 %v2403_v5, %v579_v8  ;;  %v839_v27 = vadd.f32 %v838_v43, %v774_v22  ;;  %v1192_v11 = vmul.f32 %v2910_v9, %v1191_v19  ;;  %v1796_v14 = vpop.eup %1795  ;;  %v1200_v5 = vand.u32 2147483648, %v2849_v16 }
 0x156   : > { %1803 = vrcp.f32 %v2955_v47  ;;  %v2963_v49 = vadd.f32 1.0, %v1796_v14  ;;  %v1213_v16 = vand.u32 2147483647, %v2912_v57  ;;  %vm1224_vm4 = vweird.f32 %v2955_v47 }
 0x157   : > { %v1622_v29 = vmul.f32 -1.442695, %v644_v15  ;;  %v1798_v6 = vpop.eup %1797  ;;  %v1623_v7 = vmul.f32 -1.442695, %v839_v27  ;;  %v1193_v48 = vadd.f32 %v2910_v9, %v1192_v11  ;;  %v1201_v55 = vor.u32 1.1754944e-38, %v1200_v5 }
 0x158   : > { %v2966_v35 = vpop.eup %1799  ;;  %v2968_v40 = vadd.f32 1.0, %v1798_v6  ;;  %v1215_v15 = vand.u32 2147483648, %v2912_v57  ;;  %v1228_v39 = vand.u32 2147483647, %v2955_v47  ;;  %v714_v14 = vpop.f32.mrf.mxu3  ;;  %vm3012_vm5 = vcmp.eq.f32.partialorder %v1213_v16, 8.507059e+37 }
 0x159   : > { %1805 = vpow2.f32 %v1622_v29  ;;  %v1802_v43 = vpop.eup %1801  ;;  %v1205_v42 = vmul.f32 %v2966_v35, %v2912_v57  ;;  %v1197_v22 = vsel %vm2981_vm0, %v2910_v9, %v1193_v48  ;;  %vm1210_vm3 = vweird.f32 %v2966_v35 }
 0x15a   : > { %v581_v54 = vpop.f32.mrf.mxu1  ;;  %v776_v44 = vpop.f32.mrf.mxu2  ;;  %1807 = vrcp.f32 %v2963_v49  ;;  %v1230_v48 = vand.u32 2147483648, %v2955_v47  ;;  %vm3025_vm6 = vmor %vm1209_vm2, %vm1210_vm3  ;;  %vm1229_vm10 = vcmp.eq.f32.partialorder %v1228_v39, 8.507059e+37  ;;  %vm1239_vm11 = vweird.f32 %v2963_v49 }
 0x15b   : > { %v582_v61 = vadd.f32 %v581_v54, %v2433_v21  ;;  %v777_v38 = vadd.f32 %v776_v44, %v711_v41  ;;  %v841_v62 = vpop.f32.mrf.mxu0  ;;  %1809 = vrcp.f32 %v2968_v40  ;;  %v2986_v21 = vadd.f32 1.0, %v1802_v43 }
 0x15c   : > { %v1206_v19 = vsub.f32 1.0, %v1205_v42  ;;  %1811 = vpow2.f32 %v1623_v7  ;;  %v2996_v27 = vpop.eup %1803  ;;  %v1216_v42 = vor.u32 1.1754944e-38, %v1215_v15  ;;  %vm981_vm12 = vweird.f32 %v2668_v60 }
 0x15d   : > { %v647_v8 = vadd.f32 %v2417_v23, %v582_v61  ;;  %v842_v36 = vadd.f32 %v841_v62, %v777_v38  ;;  %1813 = vrcp.f32 %v2986_v21  ;;  %v1202_v23 = vsel %vm1199_vm1, %v1201_v55, %v1197_v22 }
 0x15e   : > { %v1207_v41 = vmul.f32 %v2966_v35, %v1206_v19  ;;  %v1220_v11 = vmul.f32 %v2996_v27, %v2955_v47  ;;  %vm1225_vm7 = vweird.f32 %v2996_v27  ;;  %v1245_v47 = vand.u32 2147483648, %v2963_v49 }
 0x15f   : > { %1815 = vtanh.f32 %v647_v8  ;;  %v1806_v9 = vpop.eup %1805  ;;  %vm3056_vm8 = vmor %vm1224_vm4, %vm1225_vm7  ;;  %vm980_vm0 = vweird.f32 %v2566_v25  ;;  %vm1254_vm1 = vweird.f32 %v2968_v40  ;;  %vm1269_vm3 = vweird.f32 %v2986_v21 }
 0x160   : > { %1817 = vtanh.f32 %v842_v36  ;;  %v3004_v29 = vpop.eup %1807  ;;  %v3006_v5 = vadd.f32 1.0, %v1806_v9  ;;  %v1208_v6 = vadd.f32 %v2966_v35, %v1207_v41  ;;  %v1221_v38 = vsub.f32 1.0, %v1220_v11 }
 0x161   : > { %v3017_v61 = vpop.eup %1809  ;;  %v1235_v62 = vmul.f32 %v3004_v29, %v2963_v49  ;;  %vm1240_vm9 = vweird.f32 %v3004_v29 }
 0x162   : > { %v584_v54 = vpop.f32.mrf.mxu1  ;;  %v779_v44 = vpop.f32.mrf.mxu2  ;;  %v1250_v19 = vmul.f32 %v3017_v61, %v2968_v40  ;;  %1819 = vrcp.f32 %v3006_v5  ;;  %v1212_v55 = vsel %vm3025_vm6, %v2966_v35, %v1208_v6  ;;  %v1222_v11 = vmul.f32 %v2996_v27, %v1221_v38  ;;  %vm3084_vm13 = vmor %vm1239_vm11, %vm1240_vm9 }
 0x163   : > { %v585_v10 = vadd.f32 %v584_v54, %v2447_v26  ;;  %v844_v8 = vpop.f32.mrf.mxu0  ;;  %v1812_v22 = vpop.eup %1811  ;;  %v780_v36 = vadd.f32 %v779_v44, %v714_v14  ;;  %v1236_v16 = vsub.f32 1.0, %v1235_v62  ;;  %v1217_v9 = vsel %vm3012_vm5, %v1216_v42, %v1212_v55  ;;  %vm3158_vm9 = vmor %vm980_vm0, %vm981_vm12 }
 0x164   : > { %v3036_v57 = vpop.eup %1813  ;;  %v3038_v41 = vadd.f32 1.0, %v1812_v22  ;;  %v1231_v54 = vor.u32 1.1754944e-38, %v1230_v48  ;;  %v1251_v14 = vsub.f32 1.0, %v1250_v19  ;;  %v1243_v38 = vand.u32 2147483647, %v2963_v49 }
 0x165   : > { %v650_v26 = vadd.f32 %v2431_v37, %v585_v10  ;;  %v1816_v15 = vpop.eup %1815  ;;  %v845_v43 = vadd.f32 %v844_v8, %v780_v36  ;;  %v1237_v44 = vmul.f32 %v3004_v29, %v1236_v16  ;;  %v1265_v37 = vmul.f32 %v3036_v57, %v2986_v21  ;;  %v717_v16 = vpop.f32.mrf.mxu3 }
 0x166   : > { %v1818_v35 = vpop.eup %1817  ;;  %1821 = vrcp.f32 %v3038_v41  ;;  %v1333_v6 = vmul.f32 %v1816_v15, %v1202_v23  ;;  %v1223_v10 = vadd.f32 %v2996_v27, %v1222_v11  ;;  %vm3094_vm14 = vcmp.eq.f32.partialorder %v1243_v38, 8.507059e+37 }
 0x167   : > { %v1334_v62 = vmul.f32 %v1818_v35, %v1217_v9  ;;  %1823 = vtanh.f32 %v650_v26  ;;  %v1238_v23 = vadd.f32 %v3004_v29, %v1237_v44  ;;  %v1252_v9 = vmul.f32 %v3017_v61, %v1251_v14 }
 0x168   : > { %v1341_v7 = vadd.f32 %v1333_v6, %v2655_v46  ;;  %v3063_v42 = vpop.eup %1819  ;;  %v1227_v46 = vsel %vm3056_vm8, %v2996_v27, %v1223_v10  ;;  %1825 = vtanh.f32 %v845_v43  ;;  %vm1255_vm15 = vweird.f32 %v3017_v61 }
 0x169   : > { %v1342_v8 = vadd.f32 %v1334_v62, %v2671_v12  ;;  %v3072_v19 = vmul.f32 %v3063_v42, %v3006_v5  ;;  %v1266_v12 = vsub.f32 1.0, %v1265_v37  ;;  %v1232_v27 = vsel %vm1229_vm10, %v1231_v54, %v1227_v46  ;;  %vm3114_vm2 = vmor %vm1254_vm1, %vm1255_vm15 }
 0x16a   : > { %v587_v22 = vpop.f32.mrf.mxu1  ;;  %1827 = vtanh.f32 %v1341_v7  ;;  %1365 = vst [vmem:[%s3076_s6] sm:$0xff] %v1341_v7  ;;  %v782_v26 = vpop.f32.mrf.mxu2  ;;  %v1242_v49 = vsel %vm3084_vm13, %v3004_v29, %v1238_v23  ;;  %v1246_v54 = vor.u32 1.1754944e-38, %v1245_v47  ;;  %v1253_v29 = vadd.f32 %v3017_v61, %v1252_v9 }
 0x16b   : > { %1829 = vtanh.f32 %v1342_v8  ;;  %1366 = vst [vmem:[%s3076_s6 + $0x8] sm:$0xff] %v1342_v8  ;;  %v588_v36 = vadd.f32 %v587_v22, %v2461_v31  ;;  %v1281_v31 = vsub.f32 1.0, %v3072_v19  ;;  %v1260_v6 = vand.u32 2147483648, %v2968_v40  ;;  %v847_v37 = vpop.f32.mrf.mxu0 }
 0x16c   : > { %v3089_v15 = vpop.eup %1821  ;;  %v783_v44 = vadd.f32 %v782_v26, %v717_v16  ;;  %v1247_v10 = vsel %vm3094_vm14, %v1246_v54, %v1242_v49  ;;  %v1267_v7 = vmul.f32 %v3036_v57, %v1266_v12  ;;  %v1257_v8 = vsel %vm3114_vm2, %v3017_v61, %v1253_v29 }
 0x16d   : > { %v1824_v11 = vpop.eup %1823  ;;  %v653_v43 = vadd.f32 %v2445_v52, %v588_v36  ;;  %v3108_v62 = vmul.f32 %v3089_v15, %v3038_v41  ;;  %v1258_v46 = vand.u32 2147483647, %v2968_v40  ;;  %v1261_v19 = vor.u32 1.1754944e-38, %v1260_v6  ;;  %v1322_v40 = vld [vmem:[%s2588_s26 + $0x28] sm:$0xff]  ;;  %v3421_v6 = vld [vmem:[#allocation11_spill] sm:$0xff] }
 0x16e   : > { %v1335_v35 = vmul.f32 %v1824_v11, %v1232_v27  ;;  %v1826_v14 = vpop.eup %1825  ;;  %v848_v27 = vadd.f32 %v847_v37, %v783_v44  ;;  %v1268_v55 = vadd.f32 %v3036_v57, %v1267_v7  ;;  %vm1270_vm4 = vweird.f32 %v3036_v57 }
 0x16f   : > { %1831 = vtanh.f32 %v653_v43  ;;  %v1336_v38 = vmul.f32 %v1826_v14, %v1247_v10  ;;  %vm996_vm5 = vweird.f32 %v2698_v58  ;;  %vm1259_vm6 = vcmp.eq.f32.partialorder %v1258_v46, 8.507059e+37  ;;  %vm3140_vm7 = vmor %vm1269_vm3, %vm1270_vm4 }
 0x170   : > { %v1828_v48 = vpop.eup %1827  ;;  %v1343_v23 = vadd.f32 %v1335_v35, %v2696_v13  ;;  %v979_v16 = vadd.f32 %v2668_v60, %v2743_v2  ;;  %vm1118_vm8 = vweird.f32 %v2851_v33  ;;  %v1262_v49 = vsel %vm1259_vm6, %v1261_v19, %v1257_v8  ;;  %v3427_v19 = vld [vmem:[#allocation10_spill] sm:$0xff] }
 0x171   : > { %v1830_v47 = vpop.eup %1829  ;;  %v1357_v22 = vmul.f32 %v1828_v48, %v2829_v30  ;;  %v1344_v13 = vadd.f32 %v1336_v38, %v2704_v56  ;;  %v1273_v30 = vand.u32 2147483647, %v2986_v21  ;;  %v1272_v39 = vsel %vm3140_vm7, %v3036_v57, %v1268_v55  ;;  %v3424_v38 = vld [vmem:[#allocation8_spill] sm:$0xff] }
 0x172   : > { %v590_v36 = vpop.f32.mrf.mxu1  ;;  %v1358_v12 = vmul.f32 %v1830_v47, %v2833_v34  ;;  %1833 = vtanh.f32 %v1343_v23  ;;  %1367 = vst [vmem:[%s3076_s6 + $0x10] sm:$0xff] %v1343_v23  ;;  %v1275_v34 = vand.u32 2147483648, %v2986_v21  ;;  %v1129_v21 = vsub.f32 1.0, %v2946_v18  ;;  %v785_v37 = vpop.f32.mrf.mxu2 }
 0x173   : > { %1373 = vst [vmem:[%s3132_s8] sm:$0xff] %v1357_v22  ;;  %1835 = vtanh.f32 %v848_v27  ;;  %v591_v61 = vadd.f32 %v590_v36, %v2472_v20  ;;  %vm995_vm10 = vweird.f32 %v2617_v63  ;;  %v984_v11 = vand.u32 2147483647, %v2566_v25  ;;  %v850_v7 = vpop.f32.mrf.mxu0  ;;  %v1323_v22 = vld [vmem:[%s2588_s26 + $0x30] sm:$0xff] }
 0x174   : > { %1374 = vst [vmem:[%s3132_s8 + $0x8] sm:$0xff] %v1358_v12  ;;  %1837 = vtanh.f32 %v1344_v13  ;;  %v1276_v9 = vor.u32 1.1754944e-38, %v1275_v34  ;;  %v1282_v54 = vmul.f32 %v3063_v42, %v1281_v31  ;;  %vm1117_vm11 = vweird.f32 %v2761_v32  ;;  %v720_v31 = vpop.f32.mrf.mxu3  ;;  %vm3214_vm4 = vmor %vm995_vm10, %vm996_vm5 }
 0x175   : > { %v1832_v26 = vpop.eup %1831  ;;  %1368 = vst [vmem:[%s3076_s6 + $0x18] sm:$0xff] %v1344_v13  ;;  %v656_v18 = vadd.f32 %v2459_v3, %v591_v61  ;;  %v1296_v57 = vsub.f32 1.0, %v3108_v62  ;;  %vm1274_vm13 = vcmp.eq.f32.partialorder %v1273_v30, 8.507059e+37  ;;  %v1330_v43 = vmul.f32 %v1322_v40, %v2893_v53  ;;  %vm3224_vm6 = vmor %vm1117_vm11, %vm1118_vm8 }
 0x176   : > { %v1337_v2 = vmul.f32 %v1832_v26, %v1262_v49  ;;  %v983_v35 = vsel %vm3158_vm9, %v2668_v60, %v979_v16  ;;  %v1277_v3 = vsel %vm1274_vm13, %v1276_v9, %v1272_v39  ;;  %v1283_v25 = vadd.f32 %v3063_v42, %v1282_v54 }
 0x177   : > { %vm1285_vm12 = vweird.f32 %v3063_v42  ;;  %v1288_v53 = vand.u32 2147483647, %v3006_v5  ;;  %v1290_v10 = vand.u32 2147483648, %v3006_v5  ;;  %1839 = vtanh.f32 %v656_v18  ;;  %v1324_v18 = vld [vmem:[%s2588_s26 + $0x38] sm:$0xff]  ;;  %s1867_s26 = scalar_lea.hbm %s1866_s24, 64 }
 0x178   : > { %v1834_v29 = vpop.eup %1833  ;;  %v1345_v44 = vadd.f32 %v1337_v2, %v3421_v6  ;;  %vm985_vm14 = vcmp.eq.f32.partialorder %v984_v11, 8.507059e+37  ;;  %vm1284_vm15 = vweird.f32 %v3006_v5  ;;  %vm3182_vm0 = vcmp.eq.f32.partialorder %v1121_v50, 8.507059e+37  ;;  %p1868_p12 = scmp.ne.s32.totalorder %s1866_s24, %s1867_s26 }
 0x179   : > { %v1836_v14 = vpop.eup %1835  ;;  %v1359_v62 = vmul.f32 %v1834_v29, %v2936_v1  ;;  %v1143_v1 = vmul.f32 %v2949_v59, %v2870_v24  ;;  %v988_v8 = vsel %vm985_vm14, %v3424_v38, %v983_v35  ;;  %vm3193_vm1 = vmor %vm1284_vm15, %vm1285_vm12  ;;  %v786_v46 = vadd.f32 %v785_v37, %v720_v31 }
 0x17a   : > { %v1838_v60 = vpop.eup %1837  ;;  %1841 = vtanh.f32 %v1345_v44  ;;  %1369 = vst [vmem:[%s3076_s6 + $0x20] sm:$0xff] %v1345_v44  ;;  %v1338_v52 = vmul.f32 %v1836_v14, %v1277_v3  ;;  %v1287_v47 = vsel %vm3193_vm1, %v3063_v42, %v1283_v25  ;;  %v994_v27 = vadd.f32 %v2698_v58, %v3427_v19  ;;  %p1869_p13 = pnand %p1868_p12, %p2030_p4 }
 0x17b   : > { %1375 = vst [vmem:[%s3132_s8 + $0x10] sm:$0xff] %v1359_v62  ;;  %v1360_v23 = vmul.f32 %v1838_v60, %v2941_v28  ;;  %v1297_v28 = vmul.f32 %v3089_v15, %v1296_v57  ;;  %v1130_v55 = vmul.f32 %v2914_v51, %v1129_v21  ;;  %vm1289_vm2 = vcmp.eq.f32.partialorder %v1288_v53, 8.507059e+37 }
 0x17c   : > { %v1346_v50 = vadd.f32 %v1338_v52, %v1330_v43  ;;  %v1291_v36 = vor.u32 1.1754944e-38, %v1290_v10  ;;  %v851_v12 = vadd.f32 %v850_v7, %v786_v46  ;;  %v999_v13 = vand.u32 2147483647, %v2617_v63  ;;  %p1870_p0 = pneg %p1869_p13 }
 0x17d   : > { %1376 = vst [vmem:[%s3132_s8 + $0x18] sm:$0xff] %v1360_v23  ;;  %v1298_v30 = vadd.f32 %v3089_v15, %v1297_v28  ;;  %vm1300_vm3 = vweird.f32 %v3089_v15  ;;  %v1840_v42 = vpop.eup %1839  ;;  %v1331_v40 = vmul.f32 %v1323_v22, %v988_v8  ;;  %v1305_v61 = vand.u32 2147483648, %v3038_v41 }
 0x17e   : > { %1843 = vtanh.f32 %v1346_v50  ;;  %1370 = vst [vmem:[%s3076_s6 + $0x28] sm:$0xff] %v1346_v50  ;;  %v1292_v56 = vsel %vm1289_vm2, %v1291_v36, %v1287_v47  ;;  %v998_v21 = vsel %vm3214_vm4, %v2698_v58, %v994_v27  ;;  %vm1299_vm5 = vweird.f32 %v3038_v41 }
 0x17f   : > { %1845 = vtanh.f32 %v851_v12  ;;  %v1339_v63 = vmul.f32 %v1840_v42, %v1292_v56  ;;  %v1303_v49 = vand.u32 2147483647, %v3038_v41  ;;  %v1120_v39 = vsel %vm3224_vm6, %v2851_v33, %v2972_v4  ;;  %vm3242_vm7 = vmor %vm1299_vm5, %vm1300_vm3 }
 0x180   : > { %v1842_v16 = vpop.eup %1841  ;;  %v1124_v9 = vor.u32 1.1754944e-38, %v1123_v17  ;;  %v1144_v20 = vsub.f32 1.0, %v1143_v1  ;;  %vm1132_vm8 = vweird.f32 %v2844_v0  ;;  %vm1000_vm9 = vcmp.eq.f32.partialorder %v999_v13, 8.507059e+37  ;;  %v3434_v17 = vld [vmem:[#allocation9_spill] sm:$0xff] }
 0x181   : > { %v1361_v2 = vmul.f32 %v1842_v16, %v2953_v45  ;;  %v1347_v41 = vadd.f32 %v1339_v63, %v1331_v40  ;;  %v1302_v32 = vsel %vm3242_vm7, %v3089_v15, %v1298_v30  ;;  %v1131_v33 = vadd.f32 %v2914_v51, %v1130_v55 }
 0x182   : > { %vm1133_vm10 = vweird.f32 %v2914_v51  ;;  %v1003_v45 = vsel %vm1000_vm9, %v3434_v17, %v998_v21  ;;  %v1306_v4 = vor.u32 1.1754944e-38, %v1305_v61  ;;  %v1125_v54 = vsel %vm3182_vm0, %v1124_v9, %v1120_v39 }
 0x183   : > { %1377 = vst [vmem:[%s3132_s8 + $0x20] sm:$0xff] %v1361_v2  ;;  %v1138_v15 = vand.u32 2147483648, %v2844_v0  ;;  %1847 = vtanh.f32 %v1347_v41  ;;  %vm1304_vm11 = vcmp.eq.f32.partialorder %v1303_v49, 8.507059e+37  ;;  %v1136_v43 = vand.u32 2147483647, %v2844_v0  ;;  %vm1134_vm13 = vmor %vm1132_vm8, %vm1133_vm10 }
 0x184   : > { %v1844_v11 = vpop.eup %1843  ;;  %1371 = vst [vmem:[%s3076_s6 + $0x30] sm:$0xff] %v1347_v41  ;;  %v1145_v35 = vmul.f32 %v2949_v59, %v1144_v20  ;;  %v1307_v6 = vsel %vm1304_vm11, %v1306_v4, %v1302_v32  ;;  %v1332_v44 = vmul.f32 %v1324_v18, %v1003_v45  ;;  %v1135_v25 = vsel %vm1134_vm13, %v2914_v51, %v1131_v33 }
 0x185   : > { %v1846_v57 = vpop.eup %1845  ;;  %v1362_v29 = vmul.f32 %v1844_v11, %v1125_v54  ;;  %v1139_v31 = vor.u32 1.1754944e-38, %v1138_v15  ;;  %vm1137_vm12 = vcmp.eq.f32.partialorder %v1136_v43, 8.507059e+37  ;;  %vm1148_vm14 = vweird.f32 %v2949_v59 }
 0x186   : > { %v1340_v3 = vmul.f32 %v1846_v57, %v1307_v6  ;;  %v1146_v14 = vadd.f32 %v2949_v59, %v1145_v35  ;;  %v1153_v53 = vand.u32 2147483648, %v2870_v24  ;;  %vm1147_vm15 = vweird.f32 %v2870_v24 }
 0x187   : > { %1378 = vst [vmem:[%s3132_s8 + $0x28] sm:$0xff] %v1362_v29  ;;  %v1140_v62 = vsel %vm1137_vm12, %v1139_v31, %v1135_v25  ;;  %v1151_v51 = vand.u32 2147483647, %v2870_v24 }
 0x188   : > { %v1348_v37 = vadd.f32 %v1340_v3, %v1332_v44 }
 0x189   : > { %v1848_v0 = vpop.eup %1847 }
 0x18a   : > { %1849 = vtanh.f32 %v1348_v37  ;;  %1372 = vst [vmem:[%s3076_s6 + $0x38] sm:$0xff] %v1348_v37  ;;  %v1363_v10 = vmul.f32 %v1848_v0, %v1140_v62  ;;  %s1871_s6 = scalar_lea.hbm %s3355_s3, 128 }
 0x18b   : > { %p1873_p2 = scmp.lt.s32.totalorder %s1871_s6, %s1867_s26 }
 0x18d   : > { %p1874_p3 = por %p1873_p2, %p1872_p1 }
 0x18f   : > { %p1875_p5 = pnand %p1874_p3, %p1870_p0 }
 0x191   : > { %1878 = shalt.err (!%p1875_p5)
}
 0x192   : > { %s1963_s11 = smov 256   ;;  %s1964_s12 = smov 16   ;;  %vm1149_vm0 = vmor %vm1147_vm15, %vm1148_vm14  ;;  %1379 = vst [vmem:[%s3132_s8 + $0x30] sm:$0xff] %v1363_v10  ;;  %v1154_v52 = vor.u32 1.1754944e-38, %v1153_v53  ;;  %vm1152_vm1 = vcmp.eq.f32.partialorder %v1151_v51, 8.507059e+37  ;;  %v1850_v7 = vpop.eup %1849 }
 0x193   : > { %1661 = dma.vmem_to_hbm [thread:$0]  (%p2030_p4), %s3273_s13, 1024, %s3275_s7, %s1382_s29, %s1963_s11, %s1963_s11, %s1964_s12   ;;  %v1150_v60 = vsel %vm1149_vm0, %v2949_v59, %v1146_v14 }
 0x194   : > { %s1420_s14 = sshll.u32 %s3132_s8, 4  ;;  %s1422_s21 = sshll.u32 %s3286_s22, 4  ;;  %v1155_v48 = vsel %vm1152_vm1, %v1154_v52, %v1150_v60  ;;  %s1421_s14 = int_to_ptr.vmem [resolvable:$true] %s1420_s14  ;;  %s1423_s21 = int_to_ptr.hbm [resolvable:$true] %s1422_s21 }
 0x195   : > { %v1364_v1 = vmul.f32 %v1850_v7, %v1155_v48  ;;  %s1387_s13 = scalar_lea.sflag [#allocation5], %s3009_s30  ;;  %s1893_s7 = sshra.s32 %s1423_s21, 4  ;;  %s1894_s7 = int_to_ptr.hbm [resolvable:$true] %s1893_s7 }
 0x196   : > { %s1895_s29 = scalar_lea.hbm %s1894_s7, 64  ;;  %s1899_s5 = scalar_lea.hbm %s3356_s4, 128 }
 0x197   : > { %1380 = vst [vmem:[%s3132_s8 + $0x38] sm:$0xff] %v1364_v1  ;;  %p1896_p6 = scmp.ne.s32.totalorder %s1894_s7, %s1895_s29  ;;  %p1900_p10 = scmp.lt.s32.totalorder %s1894_s7, %s3356_s4 }
 0x198   : > { %p1901_p11 = scmp.lt.s32.totalorder %s1899_s5, %s1895_s29 }
 0x199   : > { %p1897_p7 = pnand %p1896_p6, %p2030_p4 }
 0x19a   : > { %p1902_p12 = por %p1901_p11, %p1900_p10 }
 0x19b   : > { %p1898_p9 = pneg %p1897_p7 }
 0x19d   : > { %p1903_p13 = pnand %p1902_p12, %p1898_p9 }
 0x19f   : > { %1906 = shalt.err (!%p1903_p13)
}
 0x1a0   : > { %1662 = dma.vmem_to_hbm [thread:$0]  (%p2030_p4), %s1421_s14, 1024, %s1423_s21, %s1387_s13, %s1963_s11, %s1963_s11, %s1964_s12  }
 0x1a1 PF: > { %p1672_p0 = scmp.ge.s32.totalorder %s1961_s20, 2  ;;  %s1437_s30 = sand.u32 1, %s1941_s15  }
 0x1a2   : > { %s1438_s8 = scalar_lea.sflag [#allocation3], %s1437_s30 }
 0x1a3   : > { %p1666_p1 = pnand %p1672_p0, %p2037_p8 }
 0x1a5   : > { %p1667_p2 = pneg %p1666_p1 }
 0x1a7   : > { %1932 = dma.done.wait (%p1667_p2), %s1438_s8, 1024  }
 0x1a8   : > { %1934 = vsyncadd (%p1667_p2), %s1438_s8, 4294966272  ;;  %s1448_s6 = scalar_lea.sflag [#allocation5], %s1437_s30 }
 0x1a9   : > { %1936 = dma.done.wait (%p1667_p2), %s1448_s6, 1024  }
 0x1aa   : > { %1938 = vsyncadd (%p1667_p2), %s1448_s6, 4294966272  ;;  %s21_s20 = sadd.s32 1, %s1961_s20   ;;  %s3435_s15 = smov %s1945_s16 }
 0x1ab   : > { %p18_p3 = scmp.ge.s32.totalorder %s21_s20, 4   ;;  %s3436_s16 = smov %s1949_s17 }
 0x1ac   : > { %s3437_s17 = smov %s2043_s28  ;;  %s3438_s18 = smov %s1957_s19 }
 0x1ad   : > { %s3439_s19 = smov %s3441_s23  ;;  %20 = sbr.rel (!%p18_p3) target bundleno = 6 (0x6), region = 87 }
 0x1b2   :  { %1454 = vsyncpa [#allocation3], 1 }
 0x1b3   :  { %1456 = vsyncpa [#allocation3 + $0x1], 1 }
 0x1b4   :  { %1457 = vsyncpa [#allocation5], 1 }
 0x1b5   :  { %1459 = vsyncpa [#allocation5 + $0x1], 1 }

</bundles_post_ra>
